<compile_context>
chip_gen: v7x
topology: tpu7x:2x2x1
jax: 0.10.0
libtpu: 0.0.40
codegen_flags: <defaults>
</compile_context>

<pallas_src>
import jax
import jax.numpy as jnp
from jax.experimental import pallas as pl
from jax.experimental.pallas import tpu as pltpu


# -----------------------------------------------------------------------------
# Glue (plain JAX): farthest point sampling, ball query, channels-first grouping
# -----------------------------------------------------------------------------
def farthest_point_sample(xyz, npoint):
    """xyz: (B, N, 3) f32 -> (B, npoint) int32 indices (starts at index 0,
    matching the CUDA kernel semantics)."""
    B, N, _ = xyz.shape

    def body(i, state):
        idxs, dists, farthest = state
        idxs = idxs.at[:, i].set(farthest)
        centroid = jnp.take_along_axis(xyz, farthest[:, None, None], axis=1)  # (B,1,3)
        d = jnp.sum((xyz - centroid) ** 2, axis=-1)                           # (B,N)
        dists = jnp.minimum(dists, d)
        farthest = jnp.argmax(dists, axis=-1).astype(jnp.int32)
        return idxs, dists, farthest

    idxs = jnp.zeros((B, npoint), dtype=jnp.int32)
    dists = jnp.full((B, N), 1e10, dtype=jnp.float32)
    farthest = jnp.zeros((B,), dtype=jnp.int32)
    idxs, _, _ = jax.lax.fori_loop(0, npoint, body, (idxs, dists, farthest))
    return idxs


def ball_query(radius, nsample, xyz, new_xyz):
    """(B, npoint, nsample) int32 indices; points outside the radius are padded
    with the first in-radius index (same as pointnet2 ball_query). Uses top_k
    (partial selection) instead of a full argsort."""
    N = xyz.shape[1]
    d2 = jnp.sum((new_xyz[:, :, None, :] - xyz[:, None, :, :]) ** 2, axis=-1)  # (B,P,N)
    within = d2 < (radius ** 2)
    vals = jnp.where(within, jnp.arange(N, dtype=jnp.int32)[None, None, :], N)
    neg_top, top_idx = jax.lax.top_k(-vals, nsample)        # k smallest vals == first
    top_vals = -neg_top                                     # nsample in index order
    first = top_idx[..., :1]
    # Note: if no point is in radius, an arbitrary index is used (fine for max
    # pooling, would bias avg-pool).
    idx = jnp.where(top_vals == N, first, top_idx)
    return idx.astype(jnp.int32)


def _gather_cf(src_t, idx_sp):
    """src_t: (B, C, N), idx_sp: (B, S, P) -> (B, S, C, P) (single XLA gather,
    output already in the kernel's channels-first / sample-major layout)."""
    return jax.vmap(jax.vmap(lambda f, i: f[:, i], in_axes=(None, 0)))(src_t, idx_sp)


def query_and_group_cf(radius, nsample, xyz, new_xyz, features):
    """QueryAndGroup (use_xyz=True) emitted channels-first as
    (B, nsample, 3 + C, npoint) in bf16 (the big tensor is produced directly in
    bf16, saving a full f32 HBM round trip)."""
    idx = ball_query(radius, nsample, xyz, new_xyz)          # (B, P, S)
    idx_sp = jnp.swapaxes(idx, 1, 2)                         # (B, S, P)

    xyz_t = jnp.swapaxes(xyz, 1, 2)                          # (B, 3, N) f32
    new_xyz_t = jnp.swapaxes(new_xyz, 1, 2)                  # (B, 3, P) f32
    # relative coords computed in f32 (precision), cast after the subtract
    grouped_xyz = (_gather_cf(xyz_t, idx_sp)
                   - new_xyz_t[:, None, :, :]).astype(jnp.bfloat16)   # (B,S,3,P)
    if features is None:
        return grouped_xyz
    feat_t = jnp.swapaxes(features, 1, 2).astype(jnp.bfloat16)        # (B,C,N) bf16
    grouped_feat = _gather_cf(feat_t, idx_sp)                          # (B,S,C,P)
    return jnp.concatenate([grouped_xyz, grouped_feat], axis=2)       # (B,S,3+C,P)


# -----------------------------------------------------------------------------
# Pallas kernel: shared MLP (1x1 conv == matmul over channels) + ReLU + max pool
# -----------------------------------------------------------------------------
def _make_sa_kernel(num_layers, nsample, c_in, use_vpu_first):
    def kernel(g_ref, *rest):
        out_ref = rest[-1]                           # (C_out, TP)
        wb = rest[:-1]                               # (w0, b0, w1, b1, ...)
        # hoist weight/bias loads out of the per-sample loop
        ws = [wb[2 * l][...] for l in range(num_layers)]       # (C_l+1, C_l) bf16
        bs = [wb[2 * l + 1][...] for l in range(num_layers)]   # (C_l+1, 1)   f32
        if use_vpu_first:
            w0f = ws[0].astype(jnp.float32)
            w0_cols = [w0f[:, c:c + 1] for c in range(c_in)]   # (C_1, 1) each

        def mlp(x):                                  # x: (C_in, TP) bf16
            for l in range(num_layers):
                if l == 0 and use_vpu_first:
                    # tiny-K first layer on the VPU (frees MXU push cadence)
                    xf = x.astype(jnp.float32)
                    y = bs[0]                        # (C_1, 1) broadcasts over lanes
                    for c in range(c_in):
                        y = y + w0_cols[c] * xf[c:c + 1, :]
                else:
                    y = jnp.dot(ws[l], x, preferred_element_type=jnp.float32) + bs[l]
                y = jnp.maximum(y, 0.0)              # ReLU (BN folded into w/b)
                x = y.astype(jnp.bfloat16) if l + 1 < num_layers else y
            return x                                 # (C_out, TP) f32

        # max-pool over nsample == running VPU max over per-sample MLP results;
        # lane axis stays the point axis throughout (no transpose, no reshape).
        pooled = mlp(g_ref[0])
        for s in range(1, nsample):
            pooled = jnp.maximum(pooled, mlp(g_ref[s]))
        out_ref[...] = pooled.astype(out_ref.dtype)

    return kernel


def _tpu_vmem_bytes():
    try:
        return int(pltpu.get_tpu_info().vmem_capacity_bytes)
    except Exception:
        return 64 * 1024 * 1024          # conservative default (v7x per-TC)


def _vmem_limit_bytes():
    # ~48 MiB on v7x (64 MiB physical), ~96 MiB on v5e/v6e (128 MiB physical)
    return int(min((_tpu_vmem_bytes() * 3) // 4, 96 * 1024 * 1024))


def _pick_p_tile(B, P_pad, S, channels):
    """Largest point tile in {512,256,128} (multiples of 128 -> lane-dense)
    that fits a VMEM budget and, if possible, keeps >= 2 grid programs so both
    TensorCores on v7x get work."""
    budget = int(_tpu_vmem_bytes() * 0.4)
    c_in, c_max, c_out = channels[0], max(channels), channels[-1]
    wb_bytes = 2 * sum(ci * co * 2 + co * 4
                       for ci, co in zip(channels[:-1], channels[1:]))

    def footprint(tp):
        return (2 * S * c_in * tp * 2        # double-buffered bf16 input block
                + 2 * c_out * tp * 2         # double-buffered bf16 output block
                + 8 * c_max * tp * 4         # in-flight per-sample f32 intermediates
                + c_out * tp * 4             # running-max accumulator
                + wb_bytes)                  # weights/biases (double-buffered)

    candidates = [tp for tp in (512, 256, 128) if P_pad % tp == 0]
    fitting = [tp for tp in candidates if footprint(tp) <= budget] or [128]
    multi = [tp for tp in fitting if B * (P_pad // tp) >= 2]
    return max(multi) if multi else max(fitting)


def sa_mlp_maxpool(grouped, weights, biases, out_dtype=jnp.bfloat16):
    """grouped: (B, nsample, C_in, npoint) bf16 -> (B, C_out, npoint) via Pallas."""
    B, S, C_in, P = grouped.shape
    num_layers = len(weights)
    C_out = int(weights[-1].shape[0])
    channels = [C_in] + [int(w.shape[0]) for w in weights]

    # pad npoint to a 128 multiple: lane-dense, unmasked stores, bounded tiles
    P_pad = ((P + 127) // 128) * 128
    if P_pad != P:
        grouped = jnp.pad(grouped, ((0, 0), (0, 0), (0, 0), (0, P_pad - P)))

    TP = _pick_p_tile(B, P_pad, S, channels)
    grid = (B, P_pad // TP)

    in_specs = [pl.BlockSpec((None, S, C_in, TP), lambda b, p: (b, 0, 0, p))]
    args = [grouped]
    for w, bia in zip(weights, biases):
        in_specs.append(pl.BlockSpec(w.shape, lambda b, p: (0, 0)))
        in_specs.append(pl.BlockSpec(bia.shape, lambda b, p: (0, 0)))
        args.append(w)
        args.append(bia)
    out_spec = pl.BlockSpec((None, C_out, TP), lambda b, p: (b, 0, p))

    use_vpu_first = C_in <= 8

    flops = 2 * B * P_pad * S * sum(int(w.shape[0]) * int(w.shape[1]) for w in weights)
    bytes_accessed = (
        int(grouped.size) * 2
        + sum(int(w.size) * 2 + int(b_.size) * 4 for w, b_ in zip(weights, biases))
        + B * C_out * P_pad * jnp.dtype(out_dtype).itemsize)

    out = pl.pallas_call(
        _make_sa_kernel(num_layers, S, C_in, use_vpu_first),
        out_shape=jax.ShapeDtypeStruct((B, C_out, P_pad), out_dtype),
        grid_spec=pltpu.PrefetchScalarGridSpec(
            num_scalar_prefetch=0,
            grid=grid,
            in_specs=in_specs,
            out_specs=out_spec,
        ),
        compiler_params=pltpu.CompilerParams(
            dimension_semantics=("parallel", "parallel"),
            vmem_limit_bytes=_vmem_limit_bytes(),
        ),
        cost_estimate=pl.CostEstimate(
            flops=flops, transcendentals=0, bytes_accessed=bytes_accessed),
    )(*args)
    return out[:, :, :P] if P_pad != P else out


# -----------------------------------------------------------------------------
# Module: deterministic parameter init + forward
# -----------------------------------------------------------------------------
class PointnetSAModuleMSGPallas:
    """Concrete instantiation of _PointnetSAModuleBase (pool_method='max_pool',
    QueryAndGroup groupers with use_xyz=True, SharedMLP of
    Conv2d(1x1, bias=False) + BN + ReLU)."""

    def __init__(self, npoint, radii, nsamples, mlps, in_channels, key):
        assert len(radii) == len(nsamples) == len(mlps)
        self.npoint = npoint
        self.radii = radii
        self.nsamples = nsamples
        self.pool_method = 'max_pool'
        bn_eps = 1e-5
        bn_scale = 1.0 / jnp.sqrt(1.0 + bn_eps)  # gamma=1, mean=0, var=1, beta=0
        self.params = []  # per grouper: (weights (C_out,C_in) bf16, biases (C_out,1) f32)
        for mlp in mlps:
            chans = [in_channels + 3] + list(mlp)  # use_xyz=True
            ws, bs = [], []
            for c_in, c_out in zip(chans[:-1], chans[1:]):
                key, sub = jax.random.split(key)
                w = jax.random.normal(sub, (c_out, c_in), jnp.float32)
                w = w * (1.0 / jnp.sqrt(c_in)) * bn_scale    # BN scale folded in
                ws.append(w.astype(jnp.bfloat16))
                bs.append(jnp.zeros((c_out, 1), jnp.float32))  # BN bias folded (=0)
            self.params.append((ws, bs))

    def __call__(self, xyz, features=None, new_xyz=None):
        # xyz: (B, N, 3) f32, features: (B, N, C) f32
        if new_xyz is None and self.npoint is not None:
            fps_idx = farthest_point_sample(xyz, self.npoint)               # (B, npoint)
            new_xyz = jnp.take_along_axis(xyz, fps_idx[..., None], axis=1)  # (B, npoint, 3)

        new_features_list = []
        for radius, nsample, (ws, bs) in zip(self.radii, self.nsamples, self.params):
            grouped = query_and_group_cf(radius, nsample, xyz, new_xyz, features)
            nf = sa_mlp_maxpool(grouped, ws, bs)          # (B, C_out, npoint) bf16
            new_features_list.append(nf)

        # PyTorch layout: (B, sum(mlps[k][-1]), npoint)
        new_features = jnp.concatenate(new_features_list, axis=1)
        return new_xyz, new_features


# pure-JAX reference for the in-kernel part (mirrors the kernel's dtype flow)
def _ref_mlp_maxpool(grouped, ws, bs):
    # grouped: (B, S, C_in, P) bf16
    x = grouped
    for i, (w, b) in enumerate(zip(ws, bs)):
        y = jnp.einsum('oc,bscp->bsop', w, x,
                       preferred_element_type=jnp.float32) + b[None, None, :, :]
        y = jnp.maximum(y, 0.0)
        x = y.astype(jnp.bfloat16) if i + 1 < len(ws) else y
    return jnp.max(x, axis=1).astype(jnp.bfloat16)          # (B, C_out, P)


if __name__ == "__main__":
    key = jax.random.PRNGKey(0)
    k_xyz, k_feat, k_par = jax.random.split(key, 3)

    B, N, C = 2, 64, 4
    npoint = 16
    radii = [0.5, 1.0]
    nsamples = [8, 16]
    mlps = [[16, 32], [16, 32]]

    xyz = jax.random.normal(k_xyz, (B, N, 3), jnp.float32)
    features = jax.random.normal(k_feat, (B, N, C), jnp.float32)

    module = PointnetSAModuleMSGPallas(npoint, radii, nsamples, mlps, C, k_par)

    new_xyz, new_features = module(xyz, features)
    new_xyz = jax.block_until_ready(new_xyz)
    new_features = jax.block_until_ready(new_features)

    assert new_xyz.shape == (B, npoint, 3)
    assert new_features.shape == (B, sum(m[-1] for m in mlps), npoint)

    # sanity: compare Pallas hot path against a pure-JAX reference (same bf16 flow)
    ref_parts = []
    for radius, nsample, (ws, bs) in zip(radii, nsamples, module.params):
        grouped = query_and_group_cf(radius, nsample, xyz, new_xyz, features)
        ref_parts.append(_ref_mlp_maxpool(grouped, ws, bs))
    ref = jnp.concatenate(ref_parts, axis=1)

    got = new_features.astype(jnp.float32)
    want = ref.astype(jnp.float32)
    assert jnp.allclose(got, want, atol=5e-2, rtol=5e-2), (
        float(jnp.max(jnp.abs(got - want))))

    print("KERNEL_OK")
</pallas_src>

<mosaic_0001>
module attributes {stable_mosaic.version = 11 : i64} {
  func.func @kernel(%arg0: i32, %arg1: i32, %arg2: memref<1x8x7x128xbf16, #tpu.memory_space<vmem>>, %arg3: memref<16x7xbf16, #tpu.memory_space<vmem>>, %arg4: memref<16x1xf32, #tpu.memory_space<vmem>>, %arg5: memref<32x16xbf16, #tpu.memory_space<vmem>>, %arg6: memref<32x1xf32, #tpu.memory_space<vmem>>, %arg7: memref<1x32x128xbf16, #tpu.memory_space<vmem>>) attributes {dimension_semantics = [#tpu.dimension_semantics<parallel>, #tpu.dimension_semantics<parallel>], iteration_bounds = array<i64: 2, 1>, scalar_prefetch = 0 : i64, scratch_operands = 0 : i64, tpu.core_type = #tpu.core_type<tc>, window_params = [{transform_indices = @transform_0, window_bounds = array<i64: 1, 8, 7, 128>}, {pipeline_mode = #tpu.pipeline_mode<synchronous>, transform_indices = @transform_1, window_bounds = array<i64: 16, 7>}, {pipeline_mode = #tpu.pipeline_mode<synchronous>, transform_indices = @transform_2, window_bounds = array<i64: 16, 1>}, {pipeline_mode = #tpu.pipeline_mode<synchronous>, transform_indices = @transform_3, window_bounds = array<i64: 32, 16>}, {pipeline_mode = #tpu.pipeline_mode<synchronous>, transform_indices = @transform_4, window_bounds = array<i64: 32, 1>}, {transform_indices = @transform_5, window_bounds = array<i64: 1, 32, 128>}]} {
    %c0 = arith.constant 0 : index
    %c0_0 = arith.constant 0 : index
    %0 = vector.load %arg3[%c0, %c0_0] : memref<16x7xbf16, #tpu.memory_space<vmem>>, vector<16x7xbf16>
    %c0_1 = arith.constant 0 : index
    %c0_2 = arith.constant 0 : index
    %1 = vector.load %arg5[%c0_1, %c0_2] : memref<32x16xbf16, #tpu.memory_space<vmem>>, vector<32x16xbf16>
    %c0_3 = arith.constant 0 : index
    %c0_4 = arith.constant 0 : index
    %2 = vector.load %arg4[%c0_3, %c0_4] : memref<16x1xf32, #tpu.memory_space<vmem>>, vector<16x1xf32>
    %c0_5 = arith.constant 0 : index
    %c0_6 = arith.constant 0 : index
    %3 = vector.load %arg6[%c0_5, %c0_6] : memref<32x1xf32, #tpu.memory_space<vmem>>, vector<32x1xf32>
    %4 = arith.extf %0 : vector<16x7xbf16> to vector<16x7xf32>
    %5 = vector.extract_strided_slice %4 {offsets = [0, 0], sizes = [16, 1], strides = [1, 1]} : vector<16x7xf32> to vector<16x1xf32>
    %6 = vector.extract_strided_slice %4 {offsets = [0, 1], sizes = [16, 1], strides = [1, 1]} : vector<16x7xf32> to vector<16x1xf32>
    %7 = vector.extract_strided_slice %4 {offsets = [0, 2], sizes = [16, 1], strides = [1, 1]} : vector<16x7xf32> to vector<16x1xf32>
    %8 = vector.extract_strided_slice %4 {offsets = [0, 3], sizes = [16, 1], strides = [1, 1]} : vector<16x7xf32> to vector<16x1xf32>
    %9 = vector.extract_strided_slice %4 {offsets = [0, 4], sizes = [16, 1], strides = [1, 1]} : vector<16x7xf32> to vector<16x1xf32>
    %10 = vector.extract_strided_slice %4 {offsets = [0, 5], sizes = [16, 1], strides = [1, 1]} : vector<16x7xf32> to vector<16x1xf32>
    %11 = vector.extract_strided_slice %4 {offsets = [0, 6], sizes = [16, 1], strides = [1, 1]} : vector<16x7xf32> to vector<16x1xf32>
    %c0_7 = arith.constant 0 : index
    %c0_8 = arith.constant 0 : index
    %c0_9 = arith.constant 0 : index
    %c0_10 = arith.constant 0 : index
    %12 = vector.load %arg2[%c0_7, %c0_8, %c0_9, %c0_10] : memref<1x8x7x128xbf16, #tpu.memory_space<vmem>>, vector<1x1x7x128xbf16>
    %13 = vector.shape_cast %12 : vector<1x1x7x128xbf16> to vector<7x128xbf16>
    %14 = arith.extf %13 : vector<7x128xbf16> to vector<7x128xf32>
    %15 = vector.extract_strided_slice %14 {offsets = [0, 0], sizes = [1, 128], strides = [1, 1]} : vector<7x128xf32> to vector<1x128xf32>
    %16 = vector.broadcast %5 : vector<16x1xf32> to vector<16x128xf32>
    %17 = vector.broadcast %15 : vector<1x128xf32> to vector<16x128xf32>
    %18 = arith.mulf %16, %17 : vector<16x128xf32>
    %19 = vector.broadcast %2 : vector<16x1xf32> to vector<16x128xf32>
    %20 = arith.addf %19, %18 : vector<16x128xf32>
    %21 = vector.extract_strided_slice %14 {offsets = [1, 0], sizes = [1, 128], strides = [1, 1]} : vector<7x128xf32> to vector<1x128xf32>
    %22 = vector.broadcast %6 : vector<16x1xf32> to vector<16x128xf32>
    %23 = vector.broadcast %21 : vector<1x128xf32> to vector<16x128xf32>
    %24 = arith.mulf %22, %23 : vector<16x128xf32>
    %25 = arith.addf %20, %24 : vector<16x128xf32>
    %26 = vector.extract_strided_slice %14 {offsets = [2, 0], sizes = [1, 128], strides = [1, 1]} : vector<7x128xf32> to vector<1x128xf32>
    %27 = vector.broadcast %7 : vector<16x1xf32> to vector<16x128xf32>
    %28 = vector.broadcast %26 : vector<1x128xf32> to vector<16x128xf32>
    %29 = arith.mulf %27, %28 : vector<16x128xf32>
    %30 = arith.addf %25, %29 : vector<16x128xf32>
    %31 = vector.extract_strided_slice %14 {offsets = [3, 0], sizes = [1, 128], strides = [1, 1]} : vector<7x128xf32> to vector<1x128xf32>
    %32 = vector.broadcast %8 : vector<16x1xf32> to vector<16x128xf32>
    %33 = vector.broadcast %31 : vector<1x128xf32> to vector<16x128xf32>
    %34 = arith.mulf %32, %33 : vector<16x128xf32>
    %35 = arith.addf %30, %34 : vector<16x128xf32>
    %36 = vector.extract_strided_slice %14 {offsets = [4, 0], sizes = [1, 128], strides = [1, 1]} : vector<7x128xf32> to vector<1x128xf32>
    %37 = vector.broadcast %9 : vector<16x1xf32> to vector<16x128xf32>
    %38 = vector.broadcast %36 : vector<1x128xf32> to vector<16x128xf32>
    %39 = arith.mulf %37, %38 : vector<16x128xf32>
    %40 = arith.addf %35, %39 : vector<16x128xf32>
    %41 = vector.extract_strided_slice %14 {offsets = [5, 0], sizes = [1, 128], strides = [1, 1]} : vector<7x128xf32> to vector<1x128xf32>
    %42 = vector.broadcast %10 : vector<16x1xf32> to vector<16x128xf32>
    %43 = vector.broadcast %41 : vector<1x128xf32> to vector<16x128xf32>
    %44 = arith.mulf %42, %43 : vector<16x128xf32>
    %45 = arith.addf %40, %44 : vector<16x128xf32>
    %46 = vector.extract_strided_slice %14 {offsets = [6, 0], sizes = [1, 128], strides = [1, 1]} : vector<7x128xf32> to vector<1x128xf32>
    %47 = vector.broadcast %11 : vector<16x1xf32> to vector<16x128xf32>
    %48 = vector.broadcast %46 : vector<1x128xf32> to vector<16x128xf32>
    %49 = arith.mulf %47, %48 : vector<16x128xf32>
    %50 = arith.addf %45, %49 : vector<16x128xf32>
    %cst = arith.constant 0.000000e+00 : f32
    %51 = vector.broadcast %cst : f32 to vector<16x128xf32>
    %52 = arith.maximumf %50, %51 : vector<16x128xf32>
    %53 = arith.truncf %52 : vector<16x128xf32> to vector<16x128xbf16>
    %cst_11 = arith.constant dense<0.000000e+00> : vector<32x128xf32>
    %54 = tpu.matmul %1, %53, %cst_11 {dimension_numbers = #tpu.dot_dimension_numbers<[1], [0], [0], [1], [0, 0, 1, 1], [], []>} : vector<32x16xbf16>, vector<16x128xbf16>, vector<32x128xf32> -> vector<32x128xf32>
    %55 = vector.broadcast %3 : vector<32x1xf32> to vector<32x128xf32>
    %56 = arith.addf %54, %55 : vector<32x128xf32>
    %cst_12 = arith.constant 0.000000e+00 : f32
    %57 = vector.broadcast %cst_12 : f32 to vector<32x128xf32>
    %58 = arith.maximumf %56, %57 : vector<32x128xf32>
    %c0_13 = arith.constant 0 : index
    %c1 = arith.constant 1 : index
    %c0_14 = arith.constant 0 : index
    %c0_15 = arith.constant 0 : index
    %59 = vector.load %arg2[%c0_13, %c1, %c0_14, %c0_15] : memref<1x8x7x128xbf16, #tpu.memory_space<vmem>>, vector<1x1x7x128xbf16>
    %60 = vector.shape_cast %59 : vector<1x1x7x128xbf16> to vector<7x128xbf16>
    %61 = arith.extf %60 : vector<7x128xbf16> to vector<7x128xf32>
    %62 = vector.extract_strided_slice %61 {offsets = [0, 0], sizes = [1, 128], strides = [1, 1]} : vector<7x128xf32> to vector<1x128xf32>
    %63 = vector.broadcast %5 : vector<16x1xf32> to vector<16x128xf32>
    %64 = vector.broadcast %62 : vector<1x128xf32> to vector<16x128xf32>
    %65 = arith.mulf %63, %64 : vector<16x128xf32>
    %66 = vector.broadcast %2 : vector<16x1xf32> to vector<16x128xf32>
    %67 = arith.addf %66, %65 : vector<16x128xf32>
    %68 = vector.extract_strided_slice %61 {offsets = [1, 0], sizes = [1, 128], strides = [1, 1]} : vector<7x128xf32> to vector<1x128xf32>
    %69 = vector.broadcast %6 : vector<16x1xf32> to vector<16x128xf32>
    %70 = vector.broadcast %68 : vector<1x128xf32> to vector<16x128xf32>
    %71 = arith.mulf %69, %70 : vector<16x128xf32>
    %72 = arith.addf %67, %71 : vector<16x128xf32>
    %73 = vector.extract_strided_slice %61 {offsets = [2, 0], sizes = [1, 128], strides = [1, 1]} : vector<7x128xf32> to vector<1x128xf32>
    %74 = vector.broadcast %7 : vector<16x1xf32> to vector<16x128xf32>
    %75 = vector.broadcast %73 : vector<1x128xf32> to vector<16x128xf32>
    %76 = arith.mulf %74, %75 : vector<16x128xf32>
    %77 = arith.addf %72, %76 : vector<16x128xf32>
    %78 = vector.extract_strided_slice %61 {offsets = [3, 0], sizes = [1, 128], strides = [1, 1]} : vector<7x128xf32> to vector<1x128xf32>
    %79 = vector.broadcast %8 : vector<16x1xf32> to vector<16x128xf32>
    %80 = vector.broadcast %78 : vector<1x128xf32> to vector<16x128xf32>
    %81 = arith.mulf %79, %80 : vector<16x128xf32>
    %82 = arith.addf %77, %81 : vector<16x128xf32>
    %83 = vector.extract_strided_slice %61 {offsets = [4, 0], sizes = [1, 128], strides = [1, 1]} : vector<7x128xf32> to vector<1x128xf32>
    %84 = vector.broadcast %9 : vector<16x1xf32> to vector<16x128xf32>
    %85 = vector.broadcast %83 : vector<1x128xf32> to vector<16x128xf32>
    %86 = arith.mulf %84, %85 : vector<16x128xf32>
    %87 = arith.addf %82, %86 : vector<16x128xf32>
    %88 = vector.extract_strided_slice %61 {offsets = [5, 0], sizes = [1, 128], strides = [1, 1]} : vector<7x128xf32> to vector<1x128xf32>
    %89 = vector.broadcast %10 : vector<16x1xf32> to vector<16x128xf32>
    %90 = vector.broadcast %88 : vector<1x128xf32> to vector<16x128xf32>
    %91 = arith.mulf %89, %90 : vector<16x128xf32>
    %92 = arith.addf %87, %91 : vector<16x128xf32>
    %93 = vector.extract_strided_slice %61 {offsets = [6, 0], sizes = [1, 128], strides = [1, 1]} : vector<7x128xf32> to vector<1x128xf32>
    %94 = vector.broadcast %11 : vector<16x1xf32> to vector<16x128xf32>
    %95 = vector.broadcast %93 : vector<1x128xf32> to vector<16x128xf32>
    %96 = arith.mulf %94, %95 : vector<16x128xf32>
    %97 = arith.addf %92, %96 : vector<16x128xf32>
    %cst_16 = arith.constant 0.000000e+00 : f32
    %98 = vector.broadcast %cst_16 : f32 to vector<16x128xf32>
    %99 = arith.maximumf %97, %98 : vector<16x128xf32>
    %100 = arith.truncf %99 : vector<16x128xf32> to vector<16x128xbf16>
    %cst_17 = arith.constant dense<0.000000e+00> : vector<32x128xf32>
    %101 = tpu.matmul %1, %100, %cst_17 {dimension_numbers = #tpu.dot_dimension_numbers<[1], [0], [0], [1], [0, 0, 1, 1], [], []>} : vector<32x16xbf16>, vector<16x128xbf16>, vector<32x128xf32> -> vector<32x128xf32>
    %102 = vector.broadcast %3 : vector<32x1xf32> to vector<32x128xf32>
    %103 = arith.addf %101, %102 : vector<32x128xf32>
    %cst_18 = arith.constant 0.000000e+00 : f32
    %104 = vector.broadcast %cst_18 : f32 to vector<32x128xf32>
    %105 = arith.maximumf %103, %104 : vector<32x128xf32>
    %106 = arith.maximumf %58, %105 : vector<32x128xf32>
    %c0_19 = arith.constant 0 : index
    %c2 = arith.constant 2 : index
    %c0_20 = arith.constant 0 : index
    %c0_21 = arith.constant 0 : index
    %107 = vector.load %arg2[%c0_19, %c2, %c0_20, %c0_21] : memref<1x8x7x128xbf16, #tpu.memory_space<vmem>>, vector<1x1x7x128xbf16>
    %108 = vector.shape_cast %107 : vector<1x1x7x128xbf16> to vector<7x128xbf16>
    %109 = arith.extf %108 : vector<7x128xbf16> to vector<7x128xf32>
    %110 = vector.extract_strided_slice %109 {offsets = [0, 0], sizes = [1, 128], strides = [1, 1]} : vector<7x128xf32> to vector<1x128xf32>
    %111 = vector.broadcast %5 : vector<16x1xf32> to vector<16x128xf32>
    %112 = vector.broadcast %110 : vector<1x128xf32> to vector<16x128xf32>
    %113 = arith.mulf %111, %112 : vector<16x128xf32>
    %114 = vector.broadcast %2 : vector<16x1xf32> to vector<16x128xf32>
    %115 = arith.addf %114, %113 : vector<16x128xf32>
    %116 = vector.extract_strided_slice %109 {offsets = [1, 0], sizes = [1, 128], strides = [1, 1]} : vector<7x128xf32> to vector<1x128xf32>
    %117 = vector.broadcast %6 : vector<16x1xf32> to vector<16x128xf32>
    %118 = vector.broadcast %116 : vector<1x128xf32> to vector<16x128xf32>
    %119 = arith.mulf %117, %118 : vector<16x128xf32>
    %120 = arith.addf %115, %119 : vector<16x128xf32>
    %121 = vector.extract_strided_slice %109 {offsets = [2, 0], sizes = [1, 128], strides = [1, 1]} : vector<7x128xf32> to vector<1x128xf32>
    %122 = vector.broadcast %7 : vector<16x1xf32> to vector<16x128xf32>
    %123 = vector.broadcast %121 : vector<1x128xf32> to vector<16x128xf32>
    %124 = arith.mulf %122, %123 : vector<16x128xf32>
    %125 = arith.addf %120, %124 : vector<16x128xf32>
    %126 = vector.extract_strided_slice %109 {offsets = [3, 0], sizes = [1, 128], strides = [1, 1]} : vector<7x128xf32> to vector<1x128xf32>
    %127 = vector.broadcast %8 : vector<16x1xf32> to vector<16x128xf32>
    %128 = vector.broadcast %126 : vector<1x128xf32> to vector<16x128xf32>
    %129 = arith.mulf %127, %128 : vector<16x128xf32>
    %130 = arith.addf %125, %129 : vector<16x128xf32>
    %131 = vector.extract_strided_slice %109 {offsets = [4, 0], sizes = [1, 128], strides = [1, 1]} : vector<7x128xf32> to vector<1x128xf32>
    %132 = vector.broadcast %9 : vector<16x1xf32> to vector<16x128xf32>
    %133 = vector.broadcast %131 : vector<1x128xf32> to vector<16x128xf32>
    %134 = arith.mulf %132, %133 : vector<16x128xf32>
    %135 = arith.addf %130, %134 : vector<16x128xf32>
    %136 = vector.extract_strided_slice %109 {offsets = [5, 0], sizes = [1, 128], strides = [1, 1]} : vector<7x128xf32> to vector<1x128xf32>
    %137 = vector.broadcast %10 : vector<16x1xf32> to vector<16x128xf32>
    %138 = vector.broadcast %136 : vector<1x128xf32> to vector<16x128xf32>
    %139 = arith.mulf %137, %138 : vector<16x128xf32>
    %140 = arith.addf %135, %139 : vector<16x128xf32>
    %141 = vector.extract_strided_slice %109 {offsets = [6, 0], sizes = [1, 128], strides = [1, 1]} : vector<7x128xf32> to vector<1x128xf32>
    %142 = vector.broadcast %11 : vector<16x1xf32> to vector<16x128xf32>
    %143 = vector.broadcast %141 : vector<1x128xf32> to vector<16x128xf32>
    %144 = arith.mulf %142, %143 : vector<16x128xf32>
    %145 = arith.addf %140, %144 : vector<16x128xf32>
    %cst_22 = arith.constant 0.000000e+00 : f32
    %146 = vector.broadcast %cst_22 : f32 to vector<16x128xf32>
    %147 = arith.maximumf %145, %146 : vector<16x128xf32>
    %148 = arith.truncf %147 : vector<16x128xf32> to vector<16x128xbf16>
    %cst_23 = arith.constant dense<0.000000e+00> : vector<32x128xf32>
    %149 = tpu.matmul %1, %148, %cst_23 {dimension_numbers = #tpu.dot_dimension_numbers<[1], [0], [0], [1], [0, 0, 1, 1], [], []>} : vector<32x16xbf16>, vector<16x128xbf16>, vector<32x128xf32> -> vector<32x128xf32>
    %150 = vector.broadcast %3 : vector<32x1xf32> to vector<32x128xf32>
    %151 = arith.addf %149, %150 : vector<32x128xf32>
    %cst_24 = arith.constant 0.000000e+00 : f32
    %152 = vector.broadcast %cst_24 : f32 to vector<32x128xf32>
    %153 = arith.maximumf %151, %152 : vector<32x128xf32>
    %154 = arith.maximumf %106, %153 : vector<32x128xf32>
    %c0_25 = arith.constant 0 : index
    %c3 = arith.constant 3 : index
    %c0_26 = arith.constant 0 : index
    %c0_27 = arith.constant 0 : index
    %155 = vector.load %arg2[%c0_25, %c3, %c0_26, %c0_27] : memref<1x8x7x128xbf16, #tpu.memory_space<vmem>>, vector<1x1x7x128xbf16>
    %156 = vector.shape_cast %155 : vector<1x1x7x128xbf16> to vector<7x128xbf16>
    %157 = arith.extf %156 : vector<7x128xbf16> to vector<7x128xf32>
    %158 = vector.extract_strided_slice %157 {offsets = [0, 0], sizes = [1, 128], strides = [1, 1]} : vector<7x128xf32> to vector<1x128xf32>
    %159 = vector.broadcast %5 : vector<16x1xf32> to vector<16x128xf32>
    %160 = vector.broadcast %158 : vector<1x128xf32> to vector<16x128xf32>
    %161 = arith.mulf %159, %160 : vector<16x128xf32>
    %162 = vector.broadcast %2 : vector<16x1xf32> to vector<16x128xf32>
    %163 = arith.addf %162, %161 : vector<16x128xf32>
    %164 = vector.extract_strided_slice %157 {offsets = [1, 0], sizes = [1, 128], strides = [1, 1]} : vector<7x128xf32> to vector<1x128xf32>
    %165 = vector.broadcast %6 : vector<16x1xf32> to vector<16x128xf32>
    %166 = vector.broadcast %164 : vector<1x128xf32> to vector<16x128xf32>
    %167 = arith.mulf %165, %166 : vector<16x128xf32>
    %168 = arith.addf %163, %167 : vector<16x128xf32>
    %169 = vector.extract_strided_slice %157 {offsets = [2, 0], sizes = [1, 128], strides = [1, 1]} : vector<7x128xf32> to vector<1x128xf32>
    %170 = vector.broadcast %7 : vector<16x1xf32> to vector<16x128xf32>
    %171 = vector.broadcast %169 : vector<1x128xf32> to vector<16x128xf32>
    %172 = arith.mulf %170, %171 : vector<16x128xf32>
    %173 = arith.addf %168, %172 : vector<16x128xf32>
    %174 = vector.extract_strided_slice %157 {offsets = [3, 0], sizes = [1, 128], strides = [1, 1]} : vector<7x128xf32> to vector<1x128xf32>
    %175 = vector.broadcast %8 : vector<16x1xf32> to vector<16x128xf32>
    %176 = vector.broadcast %174 : vector<1x128xf32> to vector<16x128xf32>
    %177 = arith.mulf %175, %176 : vector<16x128xf32>
    %178 = arith.addf %173, %177 : vector<16x128xf32>
    %179 = vector.extract_strided_slice %157 {offsets = [4, 0], sizes = [1, 128], strides = [1, 1]} : vector<7x128xf32> to vector<1x128xf32>
    %180 = vector.broadcast %9 : vector<16x1xf32> to vector<16x128xf32>
    %181 = vector.broadcast %179 : vector<1x128xf32> to vector<16x128xf32>
    %182 = arith.mulf %180, %181 : vector<16x128xf32>
    %183 = arith.addf %178, %182 : vector<16x128xf32>
    %184 = vector.extract_strided_slice %157 {offsets = [5, 0], sizes = [1, 128], strides = [1, 1]} : vector<7x128xf32> to vector<1x128xf32>
    %185 = vector.broadcast %10 : vector<16x1xf32> to vector<16x128xf32>
    %186 = vector.broadcast %184 : vector<1x128xf32> to vector<16x128xf32>
    %187 = arith.mulf %185, %186 : vector<16x128xf32>
    %188 = arith.addf %183, %187 : vector<16x128xf32>
    %189 = vector.extract_strided_slice %157 {offsets = [6, 0], sizes = [1, 128], strides = [1, 1]} : vector<7x128xf32> to vector<1x128xf32>
    %190 = vector.broadcast %11 : vector<16x1xf32> to vector<16x128xf32>
    %191 = vector.broadcast %189 : vector<1x128xf32> to vector<16x128xf32>
    %192 = arith.mulf %190, %191 : vector<16x128xf32>
    %193 = arith.addf %188, %192 : vector<16x128xf32>
    %cst_28 = arith.constant 0.000000e+00 : f32
    %194 = vector.broadcast %cst_28 : f32 to vector<16x128xf32>
    %195 = arith.maximumf %193, %194 : vector<16x128xf32>
    %196 = arith.truncf %195 : vector<16x128xf32> to vector<16x128xbf16>
    %cst_29 = arith.constant dense<0.000000e+00> : vector<32x128xf32>
    %197 = tpu.matmul %1, %196, %cst_29 {dimension_numbers = #tpu.dot_dimension_numbers<[1], [0], [0], [1], [0, 0, 1, 1], [], []>} : vector<32x16xbf16>, vector<16x128xbf16>, vector<32x128xf32> -> vector<32x128xf32>
    %198 = vector.broadcast %3 : vector<32x1xf32> to vector<32x128xf32>
    %199 = arith.addf %197, %198 : vector<32x128xf32>
    %cst_30 = arith.constant 0.000000e+00 : f32
    %200 = vector.broadcast %cst_30 : f32 to vector<32x128xf32>
    %201 = arith.maximumf %199, %200 : vector<32x128xf32>
    %202 = arith.maximumf %154, %201 : vector<32x128xf32>
    %c0_31 = arith.constant 0 : index
    %c4 = arith.constant 4 : index
    %c0_32 = arith.constant 0 : index
    %c0_33 = arith.constant 0 : index
    %203 = vector.load %arg2[%c0_31, %c4, %c0_32, %c0_33] : memref<1x8x7x128xbf16, #tpu.memory_space<vmem>>, vector<1x1x7x128xbf16>
    %204 = vector.shape_cast %203 : vector<1x1x7x128xbf16> to vector<7x128xbf16>
    %205 = arith.extf %204 : vector<7x128xbf16> to vector<7x128xf32>
    %206 = vector.extract_strided_slice %205 {offsets = [0, 0], sizes = [1, 128], strides = [1, 1]} : vector<7x128xf32> to vector<1x128xf32>
    %207 = vector.broadcast %5 : vector<16x1xf32> to vector<16x128xf32>
    %208 = vector.broadcast %206 : vector<1x128xf32> to vector<16x128xf32>
    %209 = arith.mulf %207, %208 : vector<16x128xf32>
    %210 = vector.broadcast %2 : vector<16x1xf32> to vector<16x128xf32>
    %211 = arith.addf %210, %209 : vector<16x128xf32>
    %212 = vector.extract_strided_slice %205 {offsets = [1, 0], sizes = [1, 128], strides = [1, 1]} : vector<7x128xf32> to vector<1x128xf32>
    %213 = vector.broadcast %6 : vector<16x1xf32> to vector<16x128xf32>
    %214 = vector.broadcast %212 : vector<1x128xf32> to vector<16x128xf32>
    %215 = arith.mulf %213, %214 : vector<16x128xf32>
    %216 = arith.addf %211, %215 : vector<16x128xf32>
    %217 = vector.extract_strided_slice %205 {offsets = [2, 0], sizes = [1, 128], strides = [1, 1]} : vector<7x128xf32> to vector<1x128xf32>
    %218 = vector.broadcast %7 : vector<16x1xf32> to vector<16x128xf32>
    %219 = vector.broadcast %217 : vector<1x128xf32> to vector<16x128xf32>
    %220 = arith.mulf %218, %219 : vector<16x128xf32>
    %221 = arith.addf %216, %220 : vector<16x128xf32>
    %222 = vector.extract_strided_slice %205 {offsets = [3, 0], sizes = [1, 128], strides = [1, 1]} : vector<7x128xf32> to vector<1x128xf32>
    %223 = vector.broadcast %8 : vector<16x1xf32> to vector<16x128xf32>
    %224 = vector.broadcast %222 : vector<1x128xf32> to vector<16x128xf32>
    %225 = arith.mulf %223, %224 : vector<16x128xf32>
    %226 = arith.addf %221, %225 : vector<16x128xf32>
    %227 = vector.extract_strided_slice %205 {offsets = [4, 0], sizes = [1, 128], strides = [1, 1]} : vector<7x128xf32> to vector<1x128xf32>
    %228 = vector.broadcast %9 : vector<16x1xf32> to vector<16x128xf32>
    %229 = vector.broadcast %227 : vector<1x128xf32> to vector<16x128xf32>
    %230 = arith.mulf %228, %229 : vector<16x128xf32>
    %231 = arith.addf %226, %230 : vector<16x128xf32>
    %232 = vector.extract_strided_slice %205 {offsets = [5, 0], sizes = [1, 128], strides = [1, 1]} : vector<7x128xf32> to vector<1x128xf32>
    %233 = vector.broadcast %10 : vector<16x1xf32> to vector<16x128xf32>
    %234 = vector.broadcast %232 : vector<1x128xf32> to vector<16x128xf32>
    %235 = arith.mulf %233, %234 : vector<16x128xf32>
    %236 = arith.addf %231, %235 : vector<16x128xf32>
    %237 = vector.extract_strided_slice %205 {offsets = [6, 0], sizes = [1, 128], strides = [1, 1]} : vector<7x128xf32> to vector<1x128xf32>
    %238 = vector.broadcast %11 : vector<16x1xf32> to vector<16x128xf32>
    %239 = vector.broadcast %237 : vector<1x128xf32> to vector<16x128xf32>
    %240 = arith.mulf %238, %239 : vector<16x128xf32>
    %241 = arith.addf %236, %240 : vector<16x128xf32>
    %cst_34 = arith.constant 0.000000e+00 : f32
    %242 = vector.broadcast %cst_34 : f32 to vector<16x128xf32>
    %243 = arith.maximumf %241, %242 : vector<16x128xf32>
    %244 = arith.truncf %243 : vector<16x128xf32> to vector<16x128xbf16>
    %cst_35 = arith.constant dense<0.000000e+00> : vector<32x128xf32>
    %245 = tpu.matmul %1, %244, %cst_35 {dimension_numbers = #tpu.dot_dimension_numbers<[1], [0], [0], [1], [0, 0, 1, 1], [], []>} : vector<32x16xbf16>, vector<16x128xbf16>, vector<32x128xf32> -> vector<32x128xf32>
    %246 = vector.broadcast %3 : vector<32x1xf32> to vector<32x128xf32>
    %247 = arith.addf %245, %246 : vector<32x128xf32>
    %cst_36 = arith.constant 0.000000e+00 : f32
    %248 = vector.broadcast %cst_36 : f32 to vector<32x128xf32>
    %249 = arith.maximumf %247, %248 : vector<32x128xf32>
    %250 = arith.maximumf %202, %249 : vector<32x128xf32>
    %c0_37 = arith.constant 0 : index
    %c5 = arith.constant 5 : index
    %c0_38 = arith.constant 0 : index
    %c0_39 = arith.constant 0 : index
    %251 = vector.load %arg2[%c0_37, %c5, %c0_38, %c0_39] : memref<1x8x7x128xbf16, #tpu.memory_space<vmem>>, vector<1x1x7x128xbf16>
    %252 = vector.shape_cast %251 : vector<1x1x7x128xbf16> to vector<7x128xbf16>
    %253 = arith.extf %252 : vector<7x128xbf16> to vector<7x128xf32>
    %254 = vector.extract_strided_slice %253 {offsets = [0, 0], sizes = [1, 128], strides = [1, 1]} : vector<7x128xf32> to vector<1x128xf32>
    %255 = vector.broadcast %5 : vector<16x1xf32> to vector<16x128xf32>
    %256 = vector.broadcast %254 : vector<1x128xf32> to vector<16x128xf32>
    %257 = arith.mulf %255, %256 : vector<16x128xf32>
    %258 = vector.broadcast %2 : vector<16x1xf32> to vector<16x128xf32>
    %259 = arith.addf %258, %257 : vector<16x128xf32>
    %260 = vector.extract_strided_slice %253 {offsets = [1, 0], sizes = [1, 128], strides = [1, 1]} : vector<7x128xf32> to vector<1x128xf32>
    %261 = vector.broadcast %6 : vector<16x1xf32> to vector<16x128xf32>
    %262 = vector.broadcast %260 : vector<1x128xf32> to vector<16x128xf32>
    %263 = arith.mulf %261, %262 : vector<16x128xf32>
    %264 = arith.addf %259, %263 : vector<16x128xf32>
    %265 = vector.extract_strided_slice %253 {offsets = [2, 0], sizes = [1, 128], strides = [1, 1]} : vector<7x128xf32> to vector<1x128xf32>
    %266 = vector.broadcast %7 : vector<16x1xf32> to vector<16x128xf32>
    %267 = vector.broadcast %265 : vector<1x128xf32> to vector<16x128xf32>
    %268 = arith.mulf %266, %267 : vector<16x128xf32>
    %269 = arith.addf %264, %268 : vector<16x128xf32>
    %270 = vector.extract_strided_slice %253 {offsets = [3, 0], sizes = [1, 128], strides = [1, 1]} : vector<7x128xf32> to vector<1x128xf32>
    %271 = vector.broadcast %8 : vector<16x1xf32> to vector<16x128xf32>
    %272 = vector.broadcast %270 : vector<1x128xf32> to vector<16x128xf32>
    %273 = arith.mulf %271, %272 : vector<16x128xf32>
    %274 = arith.addf %269, %273 : vector<16x128xf32>
    %275 = vector.extract_strided_slice %253 {offsets = [4, 0], sizes = [1, 128], strides = [1, 1]} : vector<7x128xf32> to vector<1x128xf32>
    %276 = vector.broadcast %9 : vector<16x1xf32> to vector<16x128xf32>
    %277 = vector.broadcast %275 : vector<1x128xf32> to vector<16x128xf32>
    %278 = arith.mulf %276, %277 : vector<16x128xf32>
    %279 = arith.addf %274, %278 : vector<16x128xf32>
    %280 = vector.extract_strided_slice %253 {offsets = [5, 0], sizes = [1, 128], strides = [1, 1]} : vector<7x128xf32> to vector<1x128xf32>
    %281 = vector.broadcast %10 : vector<16x1xf32> to vector<16x128xf32>
    %282 = vector.broadcast %280 : vector<1x128xf32> to vector<16x128xf32>
    %283 = arith.mulf %281, %282 : vector<16x128xf32>
    %284 = arith.addf %279, %283 : vector<16x128xf32>
    %285 = vector.extract_strided_slice %253 {offsets = [6, 0], sizes = [1, 128], strides = [1, 1]} : vector<7x128xf32> to vector<1x128xf32>
    %286 = vector.broadcast %11 : vector<16x1xf32> to vector<16x128xf32>
    %287 = vector.broadcast %285 : vector<1x128xf32> to vector<16x128xf32>
    %288 = arith.mulf %286, %287 : vector<16x128xf32>
    %289 = arith.addf %284, %288 : vector<16x128xf32>
    %cst_40 = arith.constant 0.000000e+00 : f32
    %290 = vector.broadcast %cst_40 : f32 to vector<16x128xf32>
    %291 = arith.maximumf %289, %290 : vector<16x128xf32>
    %292 = arith.truncf %291 : vector<16x128xf32> to vector<16x128xbf16>
    %cst_41 = arith.constant dense<0.000000e+00> : vector<32x128xf32>
    %293 = tpu.matmul %1, %292, %cst_41 {dimension_numbers = #tpu.dot_dimension_numbers<[1], [0], [0], [1], [0, 0, 1, 1], [], []>} : vector<32x16xbf16>, vector<16x128xbf16>, vector<32x128xf32> -> vector<32x128xf32>
    %294 = vector.broadcast %3 : vector<32x1xf32> to vector<32x128xf32>
    %295 = arith.addf %293, %294 : vector<32x128xf32>
    %cst_42 = arith.constant 0.000000e+00 : f32
    %296 = vector.broadcast %cst_42 : f32 to vector<32x128xf32>
    %297 = arith.maximumf %295, %296 : vector<32x128xf32>
    %298 = arith.maximumf %250, %297 : vector<32x128xf32>
    %c0_43 = arith.constant 0 : index
    %c6 = arith.constant 6 : index
    %c0_44 = arith.constant 0 : index
    %c0_45 = arith.constant 0 : index
    %299 = vector.load %arg2[%c0_43, %c6, %c0_44, %c0_45] : memref<1x8x7x128xbf16, #tpu.memory_space<vmem>>, vector<1x1x7x128xbf16>
    %300 = vector.shape_cast %299 : vector<1x1x7x128xbf16> to vector<7x128xbf16>
    %301 = arith.extf %300 : vector<7x128xbf16> to vector<7x128xf32>
    %302 = vector.extract_strided_slice %301 {offsets = [0, 0], sizes = [1, 128], strides = [1, 1]} : vector<7x128xf32> to vector<1x128xf32>
    %303 = vector.broadcast %5 : vector<16x1xf32> to vector<16x128xf32>
    %304 = vector.broadcast %302 : vector<1x128xf32> to vector<16x128xf32>
    %305 = arith.mulf %303, %304 : vector<16x128xf32>
    %306 = vector.broadcast %2 : vector<16x1xf32> to vector<16x128xf32>
    %307 = arith.addf %306, %305 : vector<16x128xf32>
    %308 = vector.extract_strided_slice %301 {offsets = [1, 0], sizes = [1, 128], strides = [1, 1]} : vector<7x128xf32> to vector<1x128xf32>
    %309 = vector.broadcast %6 : vector<16x1xf32> to vector<16x128xf32>
    %310 = vector.broadcast %308 : vector<1x128xf32> to vector<16x128xf32>
    %311 = arith.mulf %309, %310 : vector<16x128xf32>
    %312 = arith.addf %307, %311 : vector<16x128xf32>
    %313 = vector.extract_strided_slice %301 {offsets = [2, 0], sizes = [1, 128], strides = [1, 1]} : vector<7x128xf32> to vector<1x128xf32>
    %314 = vector.broadcast %7 : vector<16x1xf32> to vector<16x128xf32>
    %315 = vector.broadcast %313 : vector<1x128xf32> to vector<16x128xf32>
    %316 = arith.mulf %314, %315 : vector<16x128xf32>
    %317 = arith.addf %312, %316 : vector<16x128xf32>
    %318 = vector.extract_strided_slice %301 {offsets = [3, 0], sizes = [1, 128], strides = [1, 1]} : vector<7x128xf32> to vector<1x128xf32>
    %319 = vector.broadcast %8 : vector<16x1xf32> to vector<16x128xf32>
    %320 = vector.broadcast %318 : vector<1x128xf32> to vector<16x128xf32>
    %321 = arith.mulf %319, %320 : vector<16x128xf32>
    %322 = arith.addf %317, %321 : vector<16x128xf32>
    %323 = vector.extract_strided_slice %301 {offsets = [4, 0], sizes = [1, 128], strides = [1, 1]} : vector<7x128xf32> to vector<1x128xf32>
    %324 = vector.broadcast %9 : vector<16x1xf32> to vector<16x128xf32>
    %325 = vector.broadcast %323 : vector<1x128xf32> to vector<16x128xf32>
    %326 = arith.mulf %324, %325 : vector<16x128xf32>
    %327 = arith.addf %322, %326 : vector<16x128xf32>
    %328 = vector.extract_strided_slice %301 {offsets = [5, 0], sizes = [1, 128], strides = [1, 1]} : vector<7x128xf32> to vector<1x128xf32>
    %329 = vector.broadcast %10 : vector<16x1xf32> to vector<16x128xf32>
    %330 = vector.broadcast %328 : vector<1x128xf32> to vector<16x128xf32>
    %331 = arith.mulf %329, %330 : vector<16x128xf32>
    %332 = arith.addf %327, %331 : vector<16x128xf32>
    %333 = vector.extract_strided_slice %301 {offsets = [6, 0], sizes = [1, 128], strides = [1, 1]} : vector<7x128xf32> to vector<1x128xf32>
    %334 = vector.broadcast %11 : vector<16x1xf32> to vector<16x128xf32>
    %335 = vector.broadcast %333 : vector<1x128xf32> to vector<16x128xf32>
    %336 = arith.mulf %334, %335 : vector<16x128xf32>
    %337 = arith.addf %332, %336 : vector<16x128xf32>
    %cst_46 = arith.constant 0.000000e+00 : f32
    %338 = vector.broadcast %cst_46 : f32 to vector<16x128xf32>
    %339 = arith.maximumf %337, %338 : vector<16x128xf32>
    %340 = arith.truncf %339 : vector<16x128xf32> to vector<16x128xbf16>
    %cst_47 = arith.constant dense<0.000000e+00> : vector<32x128xf32>
    %341 = tpu.matmul %1, %340, %cst_47 {dimension_numbers = #tpu.dot_dimension_numbers<[1], [0], [0], [1], [0, 0, 1, 1], [], []>} : vector<32x16xbf16>, vector<16x128xbf16>, vector<32x128xf32> -> vector<32x128xf32>
    %342 = vector.broadcast %3 : vector<32x1xf32> to vector<32x128xf32>
    %343 = arith.addf %341, %342 : vector<32x128xf32>
    %cst_48 = arith.constant 0.000000e+00 : f32
    %344 = vector.broadcast %cst_48 : f32 to vector<32x128xf32>
    %345 = arith.maximumf %343, %344 : vector<32x128xf32>
    %346 = arith.maximumf %298, %345 : vector<32x128xf32>
    %c0_49 = arith.constant 0 : index
    %c7 = arith.constant 7 : index
    %c0_50 = arith.constant 0 : index
    %c0_51 = arith.constant 0 : index
    %347 = vector.load %arg2[%c0_49, %c7, %c0_50, %c0_51] : memref<1x8x7x128xbf16, #tpu.memory_space<vmem>>, vector<1x1x7x128xbf16>
    %348 = vector.shape_cast %347 : vector<1x1x7x128xbf16> to vector<7x128xbf16>
    %349 = arith.extf %348 : vector<7x128xbf16> to vector<7x128xf32>
    %350 = vector.extract_strided_slice %349 {offsets = [0, 0], sizes = [1, 128], strides = [1, 1]} : vector<7x128xf32> to vector<1x128xf32>
    %351 = vector.broadcast %5 : vector<16x1xf32> to vector<16x128xf32>
    %352 = vector.broadcast %350 : vector<1x128xf32> to vector<16x128xf32>
    %353 = arith.mulf %351, %352 : vector<16x128xf32>
    %354 = vector.broadcast %2 : vector<16x1xf32> to vector<16x128xf32>
    %355 = arith.addf %354, %353 : vector<16x128xf32>
    %356 = vector.extract_strided_slice %349 {offsets = [1, 0], sizes = [1, 128], strides = [1, 1]} : vector<7x128xf32> to vector<1x128xf32>
    %357 = vector.broadcast %6 : vector<16x1xf32> to vector<16x128xf32>
    %358 = vector.broadcast %356 : vector<1x128xf32> to vector<16x128xf32>
    %359 = arith.mulf %357, %358 : vector<16x128xf32>
    %360 = arith.addf %355, %359 : vector<16x128xf32>
    %361 = vector.extract_strided_slice %349 {offsets = [2, 0], sizes = [1, 128], strides = [1, 1]} : vector<7x128xf32> to vector<1x128xf32>
    %362 = vector.broadcast %7 : vector<16x1xf32> to vector<16x128xf32>
    %363 = vector.broadcast %361 : vector<1x128xf32> to vector<16x128xf32>
    %364 = arith.mulf %362, %363 : vector<16x128xf32>
    %365 = arith.addf %360, %364 : vector<16x128xf32>
    %366 = vector.extract_strided_slice %349 {offsets = [3, 0], sizes = [1, 128], strides = [1, 1]} : vector<7x128xf32> to vector<1x128xf32>
    %367 = vector.broadcast %8 : vector<16x1xf32> to vector<16x128xf32>
    %368 = vector.broadcast %366 : vector<1x128xf32> to vector<16x128xf32>
    %369 = arith.mulf %367, %368 : vector<16x128xf32>
    %370 = arith.addf %365, %369 : vector<16x128xf32>
    %371 = vector.extract_strided_slice %349 {offsets = [4, 0], sizes = [1, 128], strides = [1, 1]} : vector<7x128xf32> to vector<1x128xf32>
    %372 = vector.broadcast %9 : vector<16x1xf32> to vector<16x128xf32>
    %373 = vector.broadcast %371 : vector<1x128xf32> to vector<16x128xf32>
    %374 = arith.mulf %372, %373 : vector<16x128xf32>
    %375 = arith.addf %370, %374 : vector<16x128xf32>
    %376 = vector.extract_strided_slice %349 {offsets = [5, 0], sizes = [1, 128], strides = [1, 1]} : vector<7x128xf32> to vector<1x128xf32>
    %377 = vector.broadcast %10 : vector<16x1xf32> to vector<16x128xf32>
    %378 = vector.broadcast %376 : vector<1x128xf32> to vector<16x128xf32>
    %379 = arith.mulf %377, %378 : vector<16x128xf32>
    %380 = arith.addf %375, %379 : vector<16x128xf32>
    %381 = vector.extract_strided_slice %349 {offsets = [6, 0], sizes = [1, 128], strides = [1, 1]} : vector<7x128xf32> to vector<1x128xf32>
    %382 = vector.broadcast %11 : vector<16x1xf32> to vector<16x128xf32>
    %383 = vector.broadcast %381 : vector<1x128xf32> to vector<16x128xf32>
    %384 = arith.mulf %382, %383 : vector<16x128xf32>
    %385 = arith.addf %380, %384 : vector<16x128xf32>
    %cst_52 = arith.constant 0.000000e+00 : f32
    %386 = vector.broadcast %cst_52 : f32 to vector<16x128xf32>
    %387 = arith.maximumf %385, %386 : vector<16x128xf32>
    %388 = arith.truncf %387 : vector<16x128xf32> to vector<16x128xbf16>
    %cst_53 = arith.constant dense<0.000000e+00> : vector<32x128xf32>
    %389 = tpu.matmul %1, %388, %cst_53 {dimension_numbers = #tpu.dot_dimension_numbers<[1], [0], [0], [1], [0, 0, 1, 1], [], []>} : vector<32x16xbf16>, vector<16x128xbf16>, vector<32x128xf32> -> vector<32x128xf32>
    %390 = vector.broadcast %3 : vector<32x1xf32> to vector<32x128xf32>
    %391 = arith.addf %389, %390 : vector<32x128xf32>
    %cst_54 = arith.constant 0.000000e+00 : f32
    %392 = vector.broadcast %cst_54 : f32 to vector<32x128xf32>
    %393 = arith.maximumf %391, %392 : vector<32x128xf32>
    %394 = arith.maximumf %346, %393 : vector<32x128xf32>
    %395 = arith.truncf %394 : vector<32x128xf32> to vector<32x128xbf16>
    %c0_55 = arith.constant 0 : index
    %c0_56 = arith.constant 0 : index
    %c0_57 = arith.constant 0 : index
    %396 = vector.load %arg7[%c0_55, %c0_56, %c0_57] : memref<1x32x128xbf16, #tpu.memory_space<vmem>>, vector<1x32x128xbf16>
    %397 = vector.shape_cast %396 : vector<1x32x128xbf16> to vector<32x128xbf16>
    %398 = vector.shape_cast %395 : vector<32x128xbf16> to vector<1x32x128xbf16>
    tpu.vector_store %arg7[%c0_55, %c0_56, %c0_57], %398 {strides = array<i32>} : memref<1x32x128xbf16, #tpu.memory_space<vmem>>, vector<1x32x128xbf16>,
    return
  }
  func.func @transform_0(%arg0: i32, %arg1: i32) -> (i32, i32, i32, i32) {
    %c0_i32 = arith.constant 0 : i32
    %c0_i32_0 = arith.constant 0 : i32
    %c0_i32_1 = arith.constant 0 : i32
    return %arg0, %c0_i32, %c0_i32_0, %arg1 : i32, i32, i32, i32
  }
  func.func @transform_1(%arg0: i32, %arg1: i32) -> (i32, i32) {
    %c0_i32 = arith.constant 0 : i32
    %c0_i32_0 = arith.constant 0 : i32
    %c0_i32_1 = arith.constant 0 : i32
    return %c0_i32, %c0_i32_0 : i32, i32
  }
  func.func @transform_2(%arg0: i32, %arg1: i32) -> (i32, i32) {
    %c0_i32 = arith.constant 0 : i32
    %c0_i32_0 = arith.constant 0 : i32
    %c0_i32_1 = arith.constant 0 : i32
    return %c0_i32, %c0_i32_0 : i32, i32
  }
  func.func @transform_3(%arg0: i32, %arg1: i32) -> (i32, i32) {
    %c0_i32 = arith.constant 0 : i32
    %c0_i32_0 = arith.constant 0 : i32
    %c0_i32_1 = arith.constant 0 : i32
    return %c0_i32, %c0_i32_0 : i32, i32
  }
  func.func @transform_4(%arg0: i32, %arg1: i32) -> (i32, i32) {
    %c0_i32 = arith.constant 0 : i32
    %c0_i32_0 = arith.constant 0 : i32
    %c0_i32_1 = arith.constant 0 : i32
    return %c0_i32, %c0_i32_0 : i32, i32
  }
  func.func @transform_5(%arg0: i32, %arg1: i32) -> (i32, i32, i32) {
    %c0_i32 = arith.constant 0 : i32
    %c0_i32_0 = arith.constant 0 : i32
    return %arg0, %c0_i32, %arg1 : i32, i32, i32
  }
}

</mosaic_0001>

<bundles_post_ra>
// kernel: tpu_custom_call.1
= control target key start
LH: loop header
LB: loop body
LE: loop exit
PB: predicated region body
PF: predicated region fallthrough
CT: control target
= control target key end

     0   :  { %10 = vsyncpa [#allocation3], 0  ;;  %s2463_s0 = inlined_call_operand.vmem [shape: bf16[2,8,7,128], index: 0, kind: input, shape index: {}]   ;;  %s2464_s1 = inlined_call_operand.vmem [shape: bf16[16,7], index: 1, kind: input, shape index: {}]   ;;  %s2465_s2 = inlined_call_operand.vmem [shape: f32[16,1], index: 2, kind: input, shape index: {}]   ;;  %s2466_s3 = inlined_call_operand.vmem [shape: bf16[32,16], index: 3, kind: input, shape index: {}]   ;;  %s2467_s4 = inlined_call_operand.vmem [shape: f32[32,1], index: 4, kind: input, shape index: {}]   ;;  %s2468_s5 = inlined_call_operand.hbm [shape: bf16[2,32,128], index: 5, kind: output, shape index: {}]  }
   0x1   :  { %12 = vsyncpa [#allocation3 + $0x1], 0  ;;  %s1794_s18 = smov 0   ;;  %s1796_s19 = smov 0  }
   0x2   :  { %s1798_s20 = smov 0   ;;  %s1800_s21 = smov 0  }
   0x3   :  { %s1802_s22 = smov 0   ;;  %s1804_s23 = smov 0  }
   0x4 LB: > { %s1428_s24 = sadd.s32 4294967295, %s1752_s23   ;;  %s1429_s25 = sadd.s32 4294967294, %s1752_s23   ;;  %s1752_s23 = sphi %s1804_s23, %s18_s23   ;;  %s1748_s22 = sphi %s1802_s22, %s2554_s22   ;;  %s1744_s21 = sphi %s1800_s21, %s2553_s21   ;;  %s1740_s20 = sphi %s1798_s20, %s2552_s20   ;;  %s1736_s19 = sphi %s1796_s19, %s2551_s19   ;;  %s1732_s18 = sphi %s1794_s18, %s2550_s18  }
   0x5   : > { %s30_s26 = sadd.s32 1, %s1748_s22  ;;  %s151_s27 = sadd.s32 1, %s1740_s20 }
   0x6   : > { %p32_p0 = scmp.ge.s32.totalorder %s30_s26, 2  ;;  %p161_p1 = scmp.ne.s32.totalorder %s1740_s20, %s1736_s19 }
   0x7   : > { %p162_p2 = scmp.eq.s32.totalorder %s1428_s24, 1  ;;  %p167_p3 = scmp.ne.s32.totalorder %s1736_s19, %s1732_s18 }
   0x8   : > { %s2556_s26 = smov (%p32_p0, %s30_s26), 0  ;;  %p168_p5 = scmp.eq.s32.totalorder %s1429_s25, 1 }
   0x9   : > { %p1834_p4 = por %p162_p2, %p161_p1  ;;  %s146_s29 = ssub.s32 %s1748_s22, %s2556_s26 }
   0xa   : > { %p1432_p6 = scmp.ge.s32.totalorder %s1752_s23, 1  ;;  %p149_p7 = scmp.eq.s32.totalorder %s146_s29, 0 }
   0xb   : > { %p1841_p8 = por %p168_p5, %p167_p3  ;;  %p209_p9 = scmp.lt.s32.totalorder %s1752_s23, 3 }
   0xc   : > { %s1847_s6 = scalar_select %p149_p7, %s1740_s20, %s151_s27  }
   0xd   : > { %p210_p10 = pnand %p1432_p6, %p209_p9 }
   0xf   : > { %213 = sbr.rel (%p210_p10) target bundleno = 474 (0x1da), region = 40 }
  0x16   : > { %v256_v0 = vld [vmem:[%s2465_s2 + $0x8] sm:$0xff]  ;;  %v1477_v1 = vld [vmem:[%s2464_s1] sm:$0xff]   ;;  %v1754_v2 = vmov 0   ;;  %v1755_v6 = vmov 1   ;;  %v1756_v8 = vmov 3   ;;  %v1757_v9 = vmov 2  }
  0x17   : > { %1633 = vset.pattern.permute.xlu1 %v1754_v2  ;;  %1627 = vset.pattern.permute.xlu0 %v1754_v2  ;;  %v1478_v3 = vunpack.c.l.bf16 %v1477_v1  ;;  %v1479_v4 = vunpack.c.h.bf16 %v1477_v1  ;;  %v255_v7 = vld [vmem:[%s2465_s2] sm:$0xff]  ;;  %v1758_v10 = vmov 4   ;;  %v1759_v11 = vmov 5   ;;  %v258_v15 = vld [vmem:[%s2467_s4 + $0x8] sm:$0xff]  ;;  %v259_v16 = vld [vmem:[%s2467_s4 + $0x10] sm:$0xff]  ;;  %p240_p11 = scmp.lt.s32.totalorder %s1744_s21, 1 }
  0x18   : > { %288 = vperm.xlu1 %1633, %v256_v0   ;;  %v1760_v12 = vmov 6   ;;  %v1861_v13 = vld [vmem:[%s2466_s3] sm:$0xff]   ;;  %vm422_vm0 = vcmask 130048   ;;  %v260_v17 = vld [vmem:[%s2467_s4 + $0x18] sm:$0xff]  ;;  %v275_v18 = vlaneseq  ;;  %s237_s15 = sand.u32 1, %s1736_s19   ;;  %s1475_s25 = sshll.u32 %s1744_s21, 8 }
  0x19   : > { %v1628_v5 = vpack.i.bf16 %v1479_v4, %v1478_v3  ;;  %1517 = vmatprep.mubr.msk.bf16.mxu0 %vm422_vm0, %v1861_v13  ;;  %1523 = vmatprep.mubr.msk.bf16.mxu1 %vm422_vm0, %v1861_v13  ;;  %v257_v14 = vld [vmem:[%s2467_s4] sm:$0xff]  ;;  %s241_s8 = scalar_select %p240_p11, %s1744_s21, 1 }
  0x1a   : > { %v276_v19 = vshrl.u32 %v275_v18, 7  ;;  %s1433_s16 = sshll.u32 %s237_s15, 4  ;;  %s2411_s7 = scalar_lea.hbm %s2468_s5, %s1475_s25 }
  0x1b   : > { %1629 = vperm.xlu0 %1627, %v1628_v5   ;;  %s1470_s9 = sshll.u32 %s241_s8, 5  ;;  %s239_s17 = scalar_lea.vmem [#allocation2], %s1433_s16 }
  0x1c   : > { %1634 = vset.pattern.permute.xlu1 %v1755_v6  ;;  %s247_s12 = scalar_lea.vmem %s2463_s0, %s1470_s9  ;;  %v277_v23 = vsub.s32 0, %v276_v19  ;;  %v1884_v24 = vsub.s32 1, %v276_v19  ;;  %v1886_v27 = vsub.s32 2, %v276_v19  ;;  %v1888_v28 = vsub.s32 3, %v276_v19  ;;  %s1350_s24 = sshll.u32 %s239_s17, 4  ;;  %s2413_s24 = int_to_ptr.vmem [resolvable:$true] %s1350_s24 }
  0x1d   : > { %1636 = vperm.xlu1 %1634, %v1628_v5   ;;  %v263_v20 = vld [vmem:[%s247_s12] sm:$0xff]   ;;  %v1443_v21 = vld [vmem:[%s247_s12 + $0x8] sm:$0xff]   ;;  %v1449_v29 = vld [vmem:[%s247_s12 + $0x10] sm:$0xff]   ;;  %v1895_v32 = vsub.s32 4, %v276_v19  ;;  %v1897_v33 = vsub.s32 5, %v276_v19  ;;  %v1899_v34 = vsub.s32 6, %v276_v19 }
  0x1e   : > { %v264_v22 = vunpack.c.l.bf16 %v263_v20  ;;  %v484_v25 = vunpack.c.h.bf16 %v263_v20  ;;  %v603_v26 = vunpack.c.l.bf16 %v1443_v21  ;;  %v722_v36 = vunpack.c.h.bf16 %v1443_v21  ;;  %v1455_v45 = vld [vmem:[%s247_s12 + $0x18] sm:$0xff]   ;;  %s2417_s8 = scalar_lea.sflag [#allocation3], %s237_s15  ;;  %s1674_s21 = scalar_lea.vmem %s2413_s24, 256 }
  0x1f   : > { %283 = vperm.xlu0 %1627, %v255_v7   ;;  %2498 = vst [vmem:[#allocation5_spill] sm:$0xff] %v1895_v32  ;;  %2499 = vst [vmem:[#allocation6_spill] sm:$0xff] %v1897_v33  ;;  %v841_v40 = vunpack.c.l.bf16 %v1449_v29  ;;  %v960_v49 = vunpack.c.h.bf16 %v1449_v29  ;;  %v1079_v57 = vunpack.c.l.bf16 %v1455_v45  ;;  %v1971_v1 = vunpack.c.h.bf16 %v1455_v45  ;;  %p1675_p12 = scmp.ne.s32.totalorder %s2413_s24, %s1674_s21  ;;  %s1761_s9 = smov [#allocation2]  }
  0x20   : > { %v1890_v30 = vrot.slane %v264_v22, %v277_v23  ;;  %v1893_v31 = vrot.slane %v264_v22, %v1884_v24  ;;  %2500 = vst [vmem:[#allocation7_spill] sm:$0xff] %v1899_v34  ;;  %v1901_v35 = vrot.slane %v484_v25, %v277_v23  ;;  %v1904_v37 = vrot.slane %v484_v25, %v1884_v24  ;;  %s1678_s10 = sshll.u32 %s1761_s9, 4  ;;  %s1679_s10 = int_to_ptr.vmem [resolvable:$false] %s1678_s10 }
  0x21   : > { %1646 = vset.pattern.permute.xlu1 %v1756_v8  ;;  %v1906_v38 = vrot.slane %v603_v26, %v277_v23  ;;  %v1909_v39 = vrot.slane %v603_v26, %v1884_v24  ;;  %v1912_v41 = vrot.slane %v264_v22, %v1886_v27  ;;  %v1915_v42 = vrot.slane %v264_v22, %v1888_v28  ;;  %p1676_p13 = pnand %p1675_p12, %p1834_p4  ;;  %s1680_s11 = scalar_lea.vmem %s1679_s10, 512 }
  0x22   : > { %1648 = vperm.xlu1 %1646, %v1628_v5   ;;  %v1918_v43 = vrot.slane %v484_v25, %v1886_v27  ;;  %v1921_v44 = vrot.slane %v484_v25, %v1888_v28  ;;  %v1924_v46 = vrot.slane %v264_v22, %v1895_v32  ;;  %v1927_v47 = vrot.slane %v484_v25, %v1895_v32  ;;  %p1681_p1 = scmp.lt.s32.totalorder %s2413_s24, %s1679_s10  ;;  %p1682_p2 = scmp.lt.s32.totalorder %s1680_s11, %s1674_s21 }
  0x23   : > { %1640 = vset.pattern.permute.xlu0 %v1757_v9  ;;  %v1930_v48 = vrot.slane %v603_v26, %v1886_v27  ;;  %v1933_v50 = vrot.slane %v264_v22, %v1897_v33  ;;  %v1936_v51 = vrot.slane %v264_v22, %v1899_v34  ;;  %v1939_v52 = vrot.slane %v603_v26, %v1888_v28  ;;  %p1677_p0 = pneg %p1676_p13 }
  0x24   : > { %1642 = vperm.xlu0 %1640, %v1628_v5   ;;  %v1941_v53 = vrot.slane %v722_v36, %v277_v23  ;;  %v1944_v54 = vrot.slane %v484_v25, %v1897_v33  ;;  %v1947_v55 = vrot.slane %v484_v25, %v1899_v34  ;;  %v1949_v56 = vrot.slane %v841_v40, %v277_v23  ;;  %p1683_p3 = por %p1682_p2, %p1681_p1 }
  0x25   : > { %v1952_v58 = vrot.slane %v603_v26, %v1895_v32  ;;  %v1955_v59 = vrot.slane %v603_v26, %v1897_v33  ;;  %v1958_v60 = vrot.slane %v603_v26, %v1899_v34  ;;  %v1961_v61 = vrot.slane %v722_v36, %v1884_v24  ;;  %2502 = vst [vmem:[#allocation9_spill] sm:$0xff] %v1971_v1 }
  0x26   : > { %1652 = vset.pattern.permute.xlu1 %v1758_v10  ;;  %v1964_v62 = vrot.slane %v722_v36, %v1886_v27  ;;  %v1967_v63 = vrot.slane %v722_v36, %v1888_v28  ;;  %v1969_v0 = vrot.slane %v960_v49, %v277_v23  ;;  %v1977_v3 = vrot.slane %v722_v36, %v1897_v33  ;;  %p1684_p5 = pnand %p1683_p3, %p1677_p0 }
  0x27   : > { %1654 = vperm.xlu1 %1652, %v1628_v5   ;;  %v1980_v4 = vrot.slane %v722_v36, %v1899_v34  ;;  %v1988_v7 = vrot.slane %v841_v40, %v1886_v27  ;;  %v1991_v8 = vrot.slane %v841_v40, %v1888_v28  ;;  %v1994_v9 = vrot.slane %v960_v49, %v1884_v24 }
  0x28   : > { %1658 = vset.pattern.permute.xlu0 %v1759_v11  ;;  %2501 = vst [vmem:[#allocation8_spill] sm:$0xff] %v1969_v0  ;;  %v1996_v10 = vrot.slane %v1079_v57, %v277_v23  ;;  %v1999_v11 = vrot.slane %v841_v40, %v1895_v32  ;;  %v2017_v18 = vrot.slane %v1079_v57, %v1884_v24 }
  0x29   : > { %1660 = vperm.xlu0 %1658, %v1628_v5   ;;  %2503 = vst [vmem:[#allocation10_spill] sm:$0xff] %v1991_v8  ;;  %2504 = vst [vmem:[#allocation11_spill] sm:$0xff] %v1994_v9  ;;  %v2020_v19 = vrot.slane %v1971_v1, %v277_v23  ;;  %v2023_v21 = vrot.slane %v960_v49, %v1897_v33  ;;  %v2026_v22 = vrot.slane %v960_v49, %v1899_v34 }
  0x2a   : > { %2505 = vst [vmem:[#allocation12_spill] sm:$0xff] %v1996_v10  ;;  %2506 = vst [vmem:[#allocation13_spill] sm:$0xff] %v1999_v11  ;;  %v2029_v25 = vrot.slane %v1079_v57, %v1886_v27  ;;  %v2032_v26 = vrot.slane %v1079_v57, %v1888_v28  ;;  %v2039_v23 = vrot.slane %v1079_v57, %v1895_v32 }
  0x2b   : > { %1664 = vset.pattern.permute.xlu1 %v1760_v12  ;;  %v2002_v12 = vrot.slane %v841_v40, %v1897_v33  ;;  %2512 = vst [vmem:[#allocation19_spill] sm:$0xff] %v2017_v18  ;;  %2513 = vst [vmem:[#allocation20_spill] sm:$0xff] %v2020_v19  ;;  %v2049_v19 = vrot.slane %v1079_v57, %v1899_v34 }
  0x2c   : > { %1666 = vperm.xlu1 %1664, %v1628_v5   ;;  %v1983_v5 = vrot.slane %v841_v40, %v1884_v24  ;;  %2514 = vst [vmem:[#allocation21_spill] sm:$0xff] %v2023_v21  ;;  %2515 = vst [vmem:[#allocation22_spill] sm:$0xff] %v2026_v22 }
  0x2d   : > { %1671 = vset.pattern.permute.xlu0 %v1754_v2  ;;  %2507 = vst [vmem:[#allocation14_spill] sm:$0xff] %v2002_v12  ;;  %2516 = vst [vmem:[#allocation23_spill] sm:$0xff] %v2029_v25 }
  0x2e   : > { %399 = vperm.xlu0 %1671, %v258_v15   ;;  %v2008_v15 = vrot.slane %v960_v49, %v1888_v28  ;;  %2517 = vst [vmem:[#allocation24_spill] sm:$0xff] %v2032_v26  ;;  %2518 = vst [vmem:[#allocation25_spill] sm:$0xff] %v2039_v23  ;;  %v2053_v26 = vrot.slane %v1971_v1, %v1886_v27 }
  0x2f   : > { %2521 = vst [vmem:[#allocation28_spill] sm:$0xff] %v2049_v19 }
  0x30   : > { %1670 = vset.pattern.permute.xlu1 %v1754_v2  ;;  %v1974_v2 = vrot.slane %v722_v36, %v1895_v32  ;;  %2509 = vst [vmem:[#allocation16_spill] sm:$0xff] %v2008_v15  ;;  %2522 = vst [vmem:[#allocation29_spill] sm:$0xff] %v2053_v26 }
  0x31   : > { %394 = vperm.xlu1 %1670, %v257_v14   ;;  %v2005_v14 = vrot.slane %v841_v40, %v1899_v34  ;;  %v2043_v40 = vrot.slane %v1971_v1, %v1884_v24 }
  0x33   : > { %2508 = vst [vmem:[#allocation15_spill] sm:$0xff] %v2005_v14  ;;  %2519 = vst [vmem:[#allocation26_spill] sm:$0xff] %v2043_v40 }
  0x35   : > { %404 = vperm.xlu1 %1670, %v259_v16   ;;  %v2011_v16 = vrot.slane %v960_v49, %v1886_v27 }
  0x37   : > { %2510 = vst [vmem:[#allocation17_spill] sm:$0xff] %v2011_v16 }
  0x39   : > { %409 = vperm.xlu1 %1670, %v260_v17   ;;  %v2014_v17 = vrot.slane %v960_v49, %v1895_v32  ;;  %v2046_v49 = vrot.slane %v1079_v57, %v1897_v33 }
  0x3b   : > { %2511 = vst [vmem:[#allocation18_spill] sm:$0xff] %v2014_v17  ;;  %2520 = vst [vmem:[#allocation27_spill] sm:$0xff] %v2046_v49 }
  0x97   : > { %v1985_v6 = vpop.permute.xlu1 %288 }
  0x9a   : > { %v1630_v20 = vpop.permute.xlu0 %1629 }
  0x9b   : > { %v2034_v29 = vunpack.i.h.bf16 %v1630_v20  ;;  %v2036_v36 = vunpack.i.l.bf16 %v1630_v20  ;;  %v2057_v20 = vrot.slane %v1971_v1, %v1888_v28 }
  0x9c   : > { %v1637_v45 = vpop.permute.xlu1 %1636 }
  0x9d   : > { %2523 = vst [vmem:[#allocation30_spill] sm:$0xff] %v2057_v20  ;;  %v2059_v23 = vunpack.i.h.bf16 %v1637_v45  ;;  %v2061_v32 = vunpack.i.l.bf16 %v1637_v45  ;;  %v279_v24 = vmul.f32 %v2036_v36, %v1890_v30  ;;  %v280_v33 = vmul.f32 %v2034_v29, %v1890_v30 }
  0x9e   : > { %v2067_v57 = vpop.permute.xlu0 %283  ;;  %v489_v27 = vmul.f32 %v2036_v36, %v1901_v35  ;;  %v490_v34 = vmul.f32 %v2034_v29, %v1901_v35  ;;  %v608_v28 = vmul.f32 %v2036_v36, %v1906_v38  ;;  %v609_v45 = vmul.f32 %v2034_v29, %v1906_v38 }
  0x9f   : > { %v291_v20 = vadd.f32 %v2067_v57, %v279_v24  ;;  %v292_v26 = vadd.f32 %v1985_v6, %v280_v33  ;;  %v305_v30 = vmul.f32 %v2061_v32, %v1893_v31  ;;  %v306_v40 = vmul.f32 %v2059_v23, %v1893_v31 }
  0xa0   : > { %v491_v19 = vadd.f32 %v489_v27, %v2067_v57  ;;  %v492_v35 = vadd.f32 %v490_v34, %v1985_v6  ;;  %v497_v49 = vmul.f32 %v2061_v32, %v1904_v37  ;;  %v498_v38 = vmul.f32 %v2059_v23, %v1904_v37 }
  0xa1   : > { %v1649_v1 = vpop.permute.xlu1 %1648  ;;  %v307_v24 = vadd.f32 %v305_v30, %v291_v20  ;;  %v308_v25 = vadd.f32 %v306_v40, %v292_v26  ;;  %v610_v33 = vadd.f32 %v608_v28, %v2067_v57  ;;  %v611_v18 = vadd.f32 %v609_v45, %v1985_v6 }
  0xa2   : > { %v2091_v10 = vunpack.i.h.bf16 %v1649_v1  ;;  %v2093_v31 = vunpack.i.l.bf16 %v1649_v1  ;;  %v499_v27 = vadd.f32 %v497_v49, %v491_v19  ;;  %v500_v22 = vadd.f32 %v498_v38, %v492_v35 }
  0xa3   : > { %v1643_v34 = vpop.permute.xlu0 %1642  ;;  %v616_v21 = vmul.f32 %v2061_v32, %v1909_v39  ;;  %v617_v37 = vmul.f32 %v2059_v23, %v1909_v39  ;;  %v2101_v26 = vmul.f32 %v2036_v36, %v1941_v53  ;;  %v2105_v40 = vmul.f32 %v2034_v29, %v1941_v53 }
  0xa4   : > { %v2107_v20 = vunpack.i.h.bf16 %v1643_v34  ;;  %v2109_v1 = vunpack.i.l.bf16 %v1643_v34  ;;  %v337_v19 = vmul.f32 %v2093_v31, %v1915_v42  ;;  %v338_v49 = vmul.f32 %v2091_v10, %v1915_v42 }
  0xa5   : > { %v513_v39 = vmul.f32 %v2093_v31, %v1921_v44  ;;  %v514_v28 = vmul.f32 %v2091_v10, %v1921_v44  ;;  %v618_v45 = vadd.f32 %v616_v21, %v610_v33  ;;  %v619_v30 = vadd.f32 %v617_v37, %v611_v18 }
  0xa6   : > { %v1655_v53 = vpop.permute.xlu1 %1654  ;;  %v321_v35 = vmul.f32 %v2109_v1, %v1912_v41  ;;  %v322_v38 = vmul.f32 %v2107_v20, %v1912_v41  ;;  %v505_v34 = vmul.f32 %v2109_v1, %v1918_v43  ;;  %v506_v42 = vmul.f32 %v2107_v20, %v1918_v43 }
  0xa7   : > { %v2127_v17 = vunpack.i.h.bf16 %v1655_v53  ;;  %v2129_v15 = vunpack.i.l.bf16 %v1655_v53  ;;  %v624_v44 = vmul.f32 %v2109_v1, %v1930_v48  ;;  %v625_v18 = vmul.f32 %v2107_v20, %v1930_v48 }
  0xa8   : > { %v1661_v21 = vpop.permute.xlu0 %1660  ;;  %v323_v33 = vadd.f32 %v321_v35, %v307_v24  ;;  %v324_v37 = vadd.f32 %v322_v38, %v308_v25  ;;  %v507_v41 = vadd.f32 %v505_v34, %v499_v27  ;;  %v508_v16 = vadd.f32 %v506_v42, %v500_v22 }
  0xa9   : > { %v2135_v9 = vunpack.i.h.bf16 %v1661_v21  ;;  %v2137_v0 = vunpack.i.l.bf16 %v1661_v21  ;;  %v353_v43 = vmul.f32 %v2129_v15, %v1924_v46  ;;  %v354_v53 = vmul.f32 %v2127_v17, %v1924_v46 }
  0xaa   : > { %v339_v14 = vadd.f32 %v337_v19, %v323_v33  ;;  %v340_v12 = vadd.f32 %v338_v49, %v324_v37  ;;  %v515_v11 = vadd.f32 %v513_v39, %v507_v41  ;;  %v516_v8 = vadd.f32 %v514_v28, %v508_v16 }
  0xab   : > { %v1667_v48 = vpop.permute.xlu1 %1666  ;;  %v369_v25 = vmul.f32 %v2137_v0, %v1933_v50  ;;  %v370_v22 = vmul.f32 %v2135_v9, %v1933_v50  ;;  %v521_v24 = vmul.f32 %v2129_v15, %v1927_v47  ;;  %v522_v27 = vmul.f32 %v2127_v17, %v1927_v47 }
  0xac   : > { %v2151_v35 = vunpack.i.h.bf16 %v1667_v48  ;;  %v2153_v46 = vunpack.i.l.bf16 %v1667_v48  ;;  %v355_v19 = vadd.f32 %v353_v43, %v339_v14  ;;  %v356_v49 = vadd.f32 %v354_v53, %v340_v12 }
  0xad   : > { %v523_v16 = vadd.f32 %v521_v24, %v515_v11  ;;  %v524_v39 = vadd.f32 %v522_v27, %v516_v8  ;;  %v529_v28 = vmul.f32 %v2137_v0, %v1944_v54  ;;  %v530_v50 = vmul.f32 %v2135_v9, %v1944_v54 }
  0xae   : > { %v371_v38 = vadd.f32 %v369_v25, %v355_v19  ;;  %v372_v34 = vadd.f32 %v370_v22, %v356_v49  ;;  %v385_v42 = vmul.f32 %v2153_v46, %v1936_v51  ;;  %v386_v47 = vmul.f32 %v2151_v35, %v1936_v51 }
  0xaf   : > { %v531_v21 = vadd.f32 %v529_v28, %v523_v16  ;;  %v532_v33 = vadd.f32 %v530_v50, %v524_v39  ;;  %v537_v11 = vmul.f32 %v2153_v46, %v1947_v55  ;;  %v538_v8 = vmul.f32 %v2151_v35, %v1947_v55 }
  0xb0   : > { %v387_v12 = vadd.f32 %v385_v42, %v371_v38  ;;  %v388_v14 = vadd.f32 %v386_v47, %v372_v34  ;;  %v626_v37 = vadd.f32 %v624_v44, %v618_v45  ;;  %v627_v54 = vadd.f32 %v625_v18, %v619_v30  ;;  %v2194_v34 = vld [vmem:[%s2466_s3 + $0x8] sm:$0xff]  }
  0xb1   : > { %v539_v41 = vadd.f32 %v537_v11, %v531_v21  ;;  %v540_v43 = vadd.f32 %v538_v8, %v532_v33  ;;  %v632_v53 = vmul.f32 %v2093_v31, %v1939_v52  ;;  %v633_v51 = vmul.f32 %v2091_v10, %v1939_v52 }
  0xb2   : > { %v389_v48 = vmax.f32 %v387_v12, 0.0  ;;  %v390_v25 = vmax.f32 %v388_v14, 0.0  ;;  %v640_v22 = vmul.f32 %v2129_v15, %v1952_v58  ;;  %v641_v55 = vmul.f32 %v2127_v17, %v1952_v58 }
  0xb3   : > { %v541_v24 = vmax.f32 %v539_v41, 0.0  ;;  %v542_v27 = vmax.f32 %v540_v43, 0.0  ;;  %v634_v45 = vadd.f32 %v632_v53, %v626_v37  ;;  %v635_v30 = vadd.f32 %v633_v51, %v627_v54 }
  0xb4   : > { %v391_v44 = vpack.c.bf16 %v390_v25, %v389_v48  ;;  %v648_v18 = vmul.f32 %v2137_v0, %v1955_v59  ;;  %v649_v19 = vmul.f32 %v2135_v9, %v1955_v59  ;;  %v656_v52 = vmul.f32 %v2153_v46, %v1958_v60 }
  0xb5   : > { %v543_v49 = vpack.c.bf16 %v542_v27, %v541_v24  ;;  %v642_v16 = vadd.f32 %v640_v22, %v634_v45  ;;  %v643_v39 = vadd.f32 %v641_v55, %v635_v30  ;;  %v657_v58 = vmul.f32 %v2151_v35, %v1958_v60 }
  0xb6   : > { %1515 = vmatprep.subr.bf16.mxu0 %v391_v44  ;;  %v729_v28 = vadd.f32 %v2101_v26, %v2067_v57  ;;  %v730_v50 = vadd.f32 %v2105_v40, %v1985_v6  ;;  %v735_v38 = vmul.f32 %v2061_v32, %v1961_v61  ;;  %v736_v59 = vmul.f32 %v2059_v23, %v1961_v61 }
  0xb7   : > { %1521 = vmatprep.subr.bf16.mxu1 %v543_v49  ;;  %1516 = vmatpush3.bf16.msra.mxu0 %v391_v44  ;;  %v650_v60 = vadd.f32 %v648_v18, %v642_v16  ;;  %v651_v42 = vadd.f32 %v649_v19, %v643_v39  ;;  %v743_v26 = vmul.f32 %v2109_v1, %v1964_v62  ;;  %v2525_v39 = vld [vmem:[#allocation13_spill] sm:$0xff] }
  0xb8   : > { %1522 = vmatpush3.bf16.msra.mxu1 %v543_v49  ;;  %v737_v40 = vadd.f32 %v735_v38, %v729_v28  ;;  %v738_v47 = vadd.f32 %v736_v59, %v730_v50  ;;  %v744_v21 = vmul.f32 %v2107_v20, %v1964_v62  ;;  %v751_v61 = vmul.f32 %v2093_v31, %v1967_v63  ;;  %v2526_v38 = vld [vmem:[#allocation14_spill] sm:$0xff] }
  0xb9   : > { %v658_v33 = vadd.f32 %v656_v52, %v650_v60  ;;  %v659_v11 = vadd.f32 %v657_v58, %v651_v42  ;;  %v752_v8 = vmul.f32 %v2091_v10, %v1967_v63  ;;  %v759_v12 = vmul.f32 %v2129_v15, %v1974_v2 }
  0xba   : > { %v745_v14 = vadd.f32 %v743_v26, %v737_v40  ;;  %v746_v37 = vadd.f32 %v744_v21, %v738_v47  ;;  %v760_v54 = vmul.f32 %v2127_v17, %v1974_v2  ;;  %v767_v41 = vmul.f32 %v2137_v0, %v1977_v3  ;;  %1518 = vmatmul.mubr.msk.bf16.vlgmr.msra.gmra.mrb[0].mxu0 %vm422_vm0, %v2194_v34  ;;  %v2527_v40 = vld [vmem:[#allocation15_spill] sm:$0xff] }
  0xbb   : > { %v660_v62 = vmax.f32 %v658_v33, 0.0  ;;  %v661_v43 = vmax.f32 %v659_v11, 0.0  ;;  %v768_v53 = vmul.f32 %v2135_v9, %v1977_v3  ;;  %v775_v63 = vmul.f32 %v2153_v46, %v1980_v4  ;;  %1524 = vmatmul.mubr.msk.bf16.vlgmr.msra.gmra.mrb[0].mxu1 %vm422_vm0, %v2194_v34  ;;  %1529 = vmatprep.mubr.msk.bf16.mxu0 %vm422_vm0, %v1861_v13  ;;  %v2528_v33 = vld [vmem:[#allocation8_spill] sm:$0xff] }
  0xbc   : > { %v753_v2 = vadd.f32 %v751_v61, %v745_v14  ;;  %v754_v51 = vadd.f32 %v752_v8, %v746_v37  ;;  %v776_v48 = vmul.f32 %v2151_v35, %v1980_v4  ;;  %v846_v25 = vmul.f32 %v2036_v36, %v1949_v56  ;;  %1535 = vmatprep.mubr.msk.bf16.mxu1 %vm422_vm0, %v1861_v13 }
  0xbd   : > { %v662_v3 = vpack.c.bf16 %v661_v43, %v660_v62  ;;  %v847_v22 = vmul.f32 %v2034_v29, %v1949_v56  ;;  %v854_v55 = vmul.f32 %v2061_v32, %v1983_v5  ;;  %v855_v24 = vmul.f32 %v2059_v23, %v1983_v5  ;;  %v2524_v56 = vld [vmem:[#allocation10_spill] sm:$0xff] }
  0xbe   : > { %v761_v27 = vadd.f32 %v759_v12, %v753_v2  ;;  %v762_v45 = vadd.f32 %v760_v54, %v754_v51  ;;  %v848_v4 = vadd.f32 %v846_v25, %v2067_v57  ;;  %v862_v30 = vmul.f32 %v2109_v1, %v1988_v7  ;;  %v2529_v54 = vld [vmem:[#allocation11_spill] sm:$0xff] }
  0xbf   : > { %1527 = vmatprep.subr.bf16.mxu0 %v662_v3  ;;  %v849_v44 = vadd.f32 %v847_v22, %v1985_v6  ;;  %v863_v18 = vmul.f32 %v2107_v20, %v1988_v7  ;;  %v870_v19 = vmul.f32 %v2093_v31, %v2524_v56  ;;  %v871_v52 = vmul.f32 %v2091_v10, %v2524_v56 }
  0xc0   : > { %v769_v5 = vadd.f32 %v767_v41, %v761_v27  ;;  %v770_v49 = vadd.f32 %v768_v53, %v762_v45  ;;  %1528 = vmatpush3.bf16.msra.mxu0 %v662_v3  ;;  %v856_v16 = vadd.f32 %v854_v55, %v848_v4  ;;  %v878_v58 = vmul.f32 %v2129_v15, %v2525_v39  ;;  %v2531_v27 = vld [vmem:[#allocation16_spill] sm:$0xff] }
  0xc1   : > { %v857_v28 = vadd.f32 %v855_v24, %v849_v44  ;;  %v879_v50 = vmul.f32 %v2127_v17, %v2525_v39  ;;  %v886_v7 = vmul.f32 %v2137_v0, %v2526_v38  ;;  %v887_v59 = vmul.f32 %v2135_v9, %v2526_v38  ;;  %v2532_v44 = vld [vmem:[#allocation18_spill] sm:$0xff] }
  0xc2   : > { %v777_v60 = vadd.f32 %v775_v63, %v769_v5  ;;  %v778_v42 = vadd.f32 %v776_v48, %v770_v49  ;;  %v864_v26 = vadd.f32 %v862_v30, %v856_v16  ;;  %v894_v47 = vmul.f32 %v2153_v46, %v2527_v40  ;;  %v2530_v48 = vld [vmem:[#allocation17_spill] sm:$0xff] }
  0xc3   : > { %v865_v21 = vadd.f32 %v863_v18, %v857_v28  ;;  %v895_v61 = vmul.f32 %v2151_v35, %v2527_v40  ;;  %v965_v11 = vmul.f32 %v2036_v36, %v2528_v33  ;;  %v966_v8 = vmul.f32 %v2034_v29, %v2528_v33  ;;  %1530 = vmatmul.mubr.msk.bf16.vlgmr.msra.gmra.mrb[4].mxu0 %vm422_vm0, %v2194_v34  ;;  %v2533_v49 = vld [vmem:[#allocation21_spill] sm:$0xff]  ;;  %v2534_v28 = vld [vmem:[#allocation22_spill] sm:$0xff] }
  0xc4   : > { %v779_v12 = vmax.f32 %v777_v60, 0.0  ;;  %v780_v14 = vmax.f32 %v778_v42, 0.0  ;;  %v872_v37 = vadd.f32 %v870_v19, %v864_v26  ;;  %v973_v41 = vmul.f32 %v2061_v32, %v2529_v54  ;;  %1541 = vmatprep.mubr.msk.bf16.mxu0 %vm422_vm0, %v1861_v13  ;;  %v2535_v26 = vld [vmem:[#allocation12_spill] sm:$0xff] }
  0xc5   : > { %v873_v62 = vadd.f32 %v871_v52, %v865_v21  ;;  %v967_v43 = vadd.f32 %v965_v11, %v2067_v57  ;;  %v968_v53 = vadd.f32 %v966_v8, %v1985_v6  ;;  %v974_v63 = vmul.f32 %v2059_v23, %v2529_v54  ;;  %v2536_v21 = vld [vmem:[#allocation19_spill] sm:$0xff] }
  0xc6   : > { %v781_v2 = vpack.c.bf16 %v780_v14, %v779_v12  ;;  %v880_v51 = vadd.f32 %v878_v58, %v872_v37  ;;  %v981_v25 = vmul.f32 %v2109_v1, %v2530_v48  ;;  %v982_v3 = vmul.f32 %v2107_v20, %v2530_v48  ;;  %v2537_v54 = vld [vmem:[#allocation23_spill] sm:$0xff] }
  0xc7   : > { %v881_v22 = vadd.f32 %v879_v50, %v873_v62  ;;  %v975_v55 = vadd.f32 %v973_v41, %v967_v43  ;;  %v976_v24 = vadd.f32 %v974_v63, %v968_v53  ;;  %v989_v45 = vmul.f32 %v2093_v31, %v2531_v27  ;;  %v2538_v43 = vld [vmem:[#allocation5_spill] sm:$0xff] }
  0xc8   : > { %1533 = vmatprep.subr.bf16.mxu1 %v781_v2  ;;  %v888_v4 = vadd.f32 %v886_v7, %v880_v51  ;;  %v990_v30 = vmul.f32 %v2091_v10, %v2531_v27  ;;  %v997_v18 = vmul.f32 %v2129_v15, %v2532_v44  ;;  %v998_v56 = vmul.f32 %v2127_v17, %v2532_v44  ;;  %v2539_v53 = vld [vmem:[#allocation9_spill] sm:$0xff] }
  0xc9   : > { %1534 = vmatpush3.bf16.msra.mxu1 %v781_v2  ;;  %v889_v19 = vadd.f32 %v887_v59, %v881_v22  ;;  %v983_v52 = vadd.f32 %v981_v25, %v975_v55  ;;  %v984_v5 = vadd.f32 %v982_v3, %v976_v24  ;;  %v1005_v16 = vmul.f32 %v2137_v0, %v2533_v49  ;;  %v2540_v22 = vld [vmem:[#allocation24_spill] sm:$0xff]  ;;  %v2541_v27 = vld [vmem:[#allocation25_spill] sm:$0xff] }
  0xca   : > { %v896_v39 = vadd.f32 %v894_v47, %v888_v4  ;;  %v1006_v58 = vmul.f32 %v2135_v9, %v2533_v49  ;;  %v1013_v50 = vmul.f32 %v2153_v46, %v2534_v28  ;;  %v1014_v38 = vmul.f32 %v2151_v35, %v2534_v28  ;;  %v2543_v49 = vld [vmem:[#allocation28_spill] sm:$0xff] }
  0xcb   : > { %v897_v7 = vadd.f32 %v895_v61, %v889_v19  ;;  %v991_v60 = vadd.f32 %v989_v45, %v983_v52  ;;  %v992_v42 = vadd.f32 %v990_v30, %v984_v5  ;;  %v1084_v59 = vmul.f32 %v2036_v36, %v2535_v26  ;;  %v2542_v19 = vld [vmem:[#allocation27_spill] sm:$0xff] }
  0xcc   : > { %v898_v40 = vmax.f32 %v896_v39, 0.0  ;;  %1536 = vmatmul.mubr.msk.bf16.vlgmr.msra.gmra.mrb[4].mxu1 %vm422_vm0, %v2194_v34  ;;  %v1085_v47 = vmul.f32 %v2034_v29, %v2535_v26  ;;  %v1092_v33 = vmul.f32 %v2061_v32, %v2536_v21  ;;  %v1093_v11 = vmul.f32 %v2059_v23, %v2536_v21 }
  0xcd   : > { %v899_v8 = vmax.f32 %v897_v7, 0.0  ;;  %v999_v61 = vadd.f32 %v997_v18, %v991_v60  ;;  %v1000_v12 = vadd.f32 %v998_v56, %v992_v42  ;;  %v1086_v14 = vadd.f32 %v1084_v59, %v2067_v57  ;;  %1547 = vmatprep.mubr.msk.bf16.mxu1 %vm422_vm0, %v1861_v13  ;;  %v2545_v42 = vld [vmem:[#allocation26_spill] sm:$0xff] }
  0xce   : > { %v1087_v37 = vadd.f32 %v1085_v47, %v1985_v6  ;;  %v1100_v41 = vmul.f32 %v2109_v1, %v2537_v54  ;;  %v1101_v62 = vmul.f32 %v2107_v20, %v2537_v54  ;;  %v1234_v63 = vrot.slane %v2539_v53, %v2538_v43 }
  0xcf   : > { %v900_v2 = vpack.c.bf16 %v899_v8, %v898_v40  ;;  %v1007_v51 = vadd.f32 %v1005_v16, %v999_v61  ;;  %v1008_v48 = vadd.f32 %v1006_v58, %v1000_v12  ;;  %v1094_v25 = vadd.f32 %v1092_v33, %v1086_v14  ;;  %v2546_v33 = vld [vmem:[#allocation29_spill] sm:$0xff]  ;;  %v2547_v61 = vld [vmem:[#allocation6_spill] sm:$0xff] }
  0xd0   : > { %v1095_v3 = vadd.f32 %v1093_v11, %v1087_v37  ;;  %v1108_v55 = vmul.f32 %v2093_v31, %v2540_v22  ;;  %v1109_v24 = vmul.f32 %v2091_v10, %v2540_v22  ;;  %v1116_v45 = vmul.f32 %v2129_v15, %v2541_v27  ;;  %v2548_v37 = vld [vmem:[#allocation7_spill] sm:$0xff] }
  0xd1   : > { %1539 = vmatprep.subr.bf16.mxu0 %v900_v2  ;;  %v1015_v4 = vadd.f32 %v1013_v50, %v1007_v51  ;;  %v1016_v30 = vadd.f32 %v1014_v38, %v1008_v48  ;;  %v1102_v44 = vadd.f32 %v1100_v41, %v1094_v25  ;;  %v1117_v18 = vmul.f32 %v2127_v17, %v2541_v27  ;;  %v2544_v50 = vld [vmem:[#allocation20_spill] sm:$0xff] }
  0xd2   : > { %1540 = vmatpush3.bf16.msra.mxu0 %v900_v2  ;;  %v1103_v56 = vadd.f32 %v1101_v62, %v1095_v3  ;;  %v1124_v52 = vmul.f32 %v2137_v0, %v2542_v19  ;;  %v1125_v5 = vmul.f32 %v2135_v9, %v2542_v19  ;;  %v1132_v16 = vmul.f32 %v2153_v46, %v2543_v49  ;;  %v2549_v62 = vld [vmem:[#allocation30_spill] sm:$0xff]  ;;  %v2370_v19 = vpop.permute.xlu0 %399 }
  0xd3   : > { %v1017_v39 = vmax.f32 %v1015_v4, 0.0  ;;  %v1018_v58 = vmax.f32 %v1016_v30, 0.0  ;;  %v1110_v28 = vadd.f32 %v1108_v55, %v1102_v44  ;;  %v1203_v38 = vmul.f32 %v2036_v36, %v2544_v50 }
  0xd4   : > { %v1111_v7 = vadd.f32 %v1109_v24, %v1103_v56  ;;  %v1204_v60 = vmul.f32 %v2034_v29, %v2544_v50  ;;  %v1211_v26 = vmul.f32 %v2061_v32, %v2545_v42  ;;  %v1212_v59 = vmul.f32 %v2059_v23, %v2545_v42 }
  0xd5   : > { %v1019_v40 = vpack.c.bf16 %v1018_v58, %v1017_v39  ;;  %v1118_v47 = vadd.f32 %v1116_v45, %v1110_v28  ;;  %v1205_v21 = vadd.f32 %v1203_v38, %v2067_v57  ;;  %v1219_v11 = vmul.f32 %v2109_v1, %v2546_v33  ;;  %1542 = vmatmul.mubr.msk.bf16.vlgmr.msra.gmra.mrb[8].mxu0 %vm422_vm0, %v2194_v34 }
  0xd6   : > { %v1119_v36 = vadd.f32 %v1117_v18, %v1111_v7  ;;  %v1133_v29 = vmul.f32 %v2151_v35, %v2543_v49  ;;  %v1206_v8 = vadd.f32 %v1204_v60, %v1985_v6  ;;  %v1220_v32 = vmul.f32 %v2107_v20, %v2546_v33  ;;  %1553 = vmatprep.mubr.msk.bf16.mxu0 %vm422_vm0, %v1861_v13 }
  0xd7   : > { %1545 = vmatprep.subr.bf16.mxu1 %v1019_v40  ;;  %v1126_v23 = vadd.f32 %v1124_v52, %v1118_v47  ;;  %v1213_v57 = vadd.f32 %v1211_v26, %v1205_v21  ;;  %v1242_v1 = vrot.slane %v2539_v53, %v2547_v61  ;;  %v1250_v54 = vrot.slane %v2539_v53, %v2548_v37 }
  0xd8   : > { %1546 = vmatpush3.bf16.msra.mxu1 %v1019_v40  ;;  %v1127_v12 = vadd.f32 %v1125_v5, %v1119_v36  ;;  %v1214_v14 = vadd.f32 %v1212_v59, %v1206_v8  ;;  %v1227_v20 = vmul.f32 %v2093_v31, %v2549_v62  ;;  %v1235_v43 = vmul.f32 %v2129_v15, %v1234_v63 }
  0xd9   : > { %v1134_v41 = vadd.f32 %v1132_v16, %v1126_v23  ;;  %v1221_v6 = vadd.f32 %v1219_v11, %v1213_v57  ;;  %v1228_v48 = vmul.f32 %v2091_v10, %v2549_v62  ;;  %v1236_v25 = vmul.f32 %v2127_v17, %v1234_v63 }
  0xda   : > { %v1135_v2 = vadd.f32 %v1133_v29, %v1127_v12  ;;  %v1222_v51 = vadd.f32 %v1220_v32, %v1214_v14  ;;  %v1243_v55 = vmul.f32 %v2137_v0, %v1242_v1  ;;  %v1244_v31 = vmul.f32 %v2135_v9, %v1242_v1 }
  0xdb   : > { %v1136_v3 = vmax.f32 %v1134_v41, 0.0  ;;  %v1229_v22 = vadd.f32 %v1227_v20, %v1221_v6  ;;  %1548 = vmatmul.mubr.msk.bf16.vlgmr.msra.gmra.mrb[8].mxu1 %vm422_vm0, %v2194_v34  ;;  %v1251_v27 = vmul.f32 %v2153_v46, %v1250_v54  ;;  %v1252_v17 = vmul.f32 %v2151_v35, %v1250_v54 }
  0xdc   : > { %v1137_v53 = vmax.f32 %v1135_v2, 0.0  ;;  %v1230_v24 = vadd.f32 %v1228_v48, %v1222_v51  ;;  %1559 = vmatprep.mubr.msk.bf16.mxu1 %vm422_vm0, %v1861_v13  ;;  %v2364_v13 = vpop.permute.xlu1 %394 }
  0xdd   : > { %v1237_v15 = vadd.f32 %v1235_v43, %v1229_v22 }
  0xde   : > { %v1138_v10 = vpack.c.bf16 %v1137_v53, %v1136_v3  ;;  %v1238_v45 = vadd.f32 %v1236_v25, %v1230_v24 }
  0xdf   : > { %v1245_v63 = vadd.f32 %v1243_v55, %v1237_v15 }
  0xe0   : > { %1551 = vmatprep.subr.bf16.mxu0 %v1138_v10  ;;  %v1246_v0 = vadd.f32 %v1244_v31, %v1238_v45  ;;  %v2366_v35 = vpop.permute.xlu1 %404 }
  0xe1   : > { %v1253_v4 = vadd.f32 %v1251_v27, %v1245_v63  ;;  %1552 = vmatpush3.bf16.msra.mxu0 %v1138_v10 }
  0xe2   : > { %v1254_v30 = vadd.f32 %v1252_v17, %v1246_v0 }
  0xe3   : > { %v1255_v44 = vmax.f32 %v1253_v4, 0.0 }
  0xe4   : > { %v1256_v18 = vmax.f32 %v1254_v30, 0.0  ;;  %1554 = vmatmul.mubr.msk.bf16.vlgmr.msra.gmra.mrb[12].mxu0 %vm422_vm0, %v2194_v34  ;;  %v2368_v46 = vpop.permute.xlu1 %409 }
  0xe6   : > { %v1257_v9 = vpack.c.bf16 %v1256_v18, %v1255_v44 }
  0xe8   : > { %1557 = vmatprep.subr.bf16.mxu1 %v1257_v9 }
  0xe9   : > { %1558 = vmatpush3.bf16.msra.mxu1 %v1257_v9 }
  0xec   : > { %1560 = vmatmul.mubr.msk.bf16.vlgmr.msra.gmra.mrb[12].mxu1 %vm422_vm0, %v2194_v34 }
 0x18d   : > { %v1519_v56 = vpop.f32.mrb[0].mxu0 }
 0x18e   : > { %v472_v52 = vadd.f32 %v1519_v56, %v2366_v35  ;;  %v1525_v5 = vpop.f32.mrb[0].mxu1  ;;  %v463_v49 = vpop.f32.mrb[1].mxu0 }
 0x18f   : > { %v587_v16 = vadd.f32 %v1525_v5, %v2366_v35  ;;  %v464_v39 = vadd.f32 %v463_v49, %v2364_v13  ;;  %v578_v58 = vpop.f32.mrb[1].mxu1  ;;  %v1520_v28 = vpop.f32.mrb[2].mxu0 }
 0x190   : > { %v480_v34 = vmax.f32 %v472_v52, 0.0  ;;  %v579_v50 = vadd.f32 %v578_v58, %v2364_v13  ;;  %v475_v38 = vadd.f32 %v1520_v28, %v2368_v46  ;;  %v1526_v7 = vpop.f32.mrb[2].mxu1  ;;  %v466_v60 = vpop.f32.mrb[3].mxu0 }
 0x191   : > { %v595_v42 = vmax.f32 %v587_v16, 0.0  ;;  %v478_v26 = vmax.f32 %v464_v39, 0.0  ;;  %v590_v59 = vadd.f32 %v1526_v7, %v2368_v46  ;;  %v467_v40 = vadd.f32 %v466_v60, %v2370_v19  ;;  %v581_v47 = vpop.f32.mrb[3].mxu1 }
 0x192   : > { %v593_v21 = vmax.f32 %v579_v50, 0.0  ;;  %v481_v33 = vmax.f32 %v475_v38, 0.0  ;;  %v582_v11 = vadd.f32 %v581_v47, %v2370_v19 }
 0x193   : > { %v599_v36 = vmax.f32 %v480_v34, %v595_v42  ;;  %v596_v29 = vmax.f32 %v590_v59, 0.0  ;;  %v479_v8 = vmax.f32 %v467_v40, 0.0 }
 0x194   : > { %v597_v32 = vmax.f32 %v478_v26, %v593_v21  ;;  %v594_v23 = vmax.f32 %v582_v11, 0.0 }
 0x195   : > { %v600_v57 = vmax.f32 %v481_v33, %v596_v29 }
 0x196   : > { %v598_v61 = vmax.f32 %v479_v8, %v594_v23  ;;  %v1531_v1 = vpop.f32.mrb[4].mxu0 }
 0x197   : > { %v706_v12 = vadd.f32 %v1531_v1, %v2366_v35  ;;  %v697_v14 = vpop.f32.mrb[5].mxu0 }
 0x198   : > { %v698_v37 = vadd.f32 %v697_v14, %v2364_v13  ;;  %v1532_v54 = vpop.f32.mrb[6].mxu0 }
 0x199   : > { %v714_v41 = vmax.f32 %v706_v12, 0.0  ;;  %v709_v6 = vadd.f32 %v1532_v54, %v2368_v46  ;;  %v700_v62 = vpop.f32.mrb[7].mxu0 }
 0x19a   : > { %v712_v20 = vmax.f32 %v698_v37, 0.0  ;;  %v701_v43 = vadd.f32 %v700_v62, %v2370_v19 }
 0x19b   : > { %v718_v2 = vmax.f32 %v599_v36, %v714_v41  ;;  %v715_v51 = vmax.f32 %v709_v6, 0.0 }
 0x19c   : > { %v716_v48 = vmax.f32 %v597_v32, %v712_v20  ;;  %v713_v25 = vmax.f32 %v701_v43, 0.0 }
 0x19d   : > { %v719_v3 = vmax.f32 %v600_v57, %v715_v51 }
 0x19e   : > { %v717_v22 = vmax.f32 %v598_v61, %v713_v25 }
 0x19f   : > { %v1537_v55 = vpop.f32.mrb[4].mxu1 }
 0x1a0   : > { %v825_v53 = vadd.f32 %v1537_v55, %v2366_v35  ;;  %v816_v24 = vpop.f32.mrb[5].mxu1 }
 0x1a1   : > { %v817_v31 = vadd.f32 %v816_v24, %v2364_v13  ;;  %v1538_v15 = vpop.f32.mrb[6].mxu1 }
 0x1a2   : > { %v833_v27 = vmax.f32 %v825_v53, 0.0  ;;  %v828_v10 = vadd.f32 %v1538_v15, %v2368_v46  ;;  %v819_v45 = vpop.f32.mrb[7].mxu1 }
 0x1a3   : > { %v831_v17 = vmax.f32 %v817_v31, 0.0  ;;  %v820_v63 = vadd.f32 %v819_v45, %v2370_v19 }
 0x1a4   : > { %v837_v0 = vmax.f32 %v718_v2, %v833_v27  ;;  %v834_v4 = vmax.f32 %v828_v10, 0.0 }
 0x1a5   : > { %v835_v30 = vmax.f32 %v716_v48, %v831_v17  ;;  %v832_v44 = vmax.f32 %v820_v63, 0.0 }
 0x1a6   : > { %v838_v18 = vmax.f32 %v719_v3, %v834_v4 }
 0x1a7   : > { %v836_v9 = vmax.f32 %v717_v22, %v832_v44 }
 0x1a8   : > { %v1543_v56 = vpop.f32.mrb[8].mxu0 }
 0x1a9   : > { %v944_v52 = vadd.f32 %v1543_v56, %v2366_v35  ;;  %v935_v5 = vpop.f32.mrb[9].mxu0 }
 0x1aa   : > { %v936_v49 = vadd.f32 %v935_v5, %v2364_v13  ;;  %v1544_v16 = vpop.f32.mrb[10].mxu0 }
 0x1ab   : > { %v952_v39 = vmax.f32 %v944_v52, 0.0  ;;  %v947_v58 = vadd.f32 %v1544_v16, %v2368_v46  ;;  %v938_v28 = vpop.f32.mrb[11].mxu0 }
 0x1ac   : > { %v950_v34 = vmax.f32 %v936_v49, 0.0  ;;  %v939_v50 = vadd.f32 %v938_v28, %v2370_v19 }
 0x1ad   : > { %v956_v38 = vmax.f32 %v837_v0, %v952_v39  ;;  %v953_v7 = vmax.f32 %v947_v58, 0.0 }
 0x1ae   : > { %v1549_v60 = vpop.f32.mrb[8].mxu1  ;;  %v954_v42 = vmax.f32 %v835_v30, %v950_v34  ;;  %v951_v26 = vmax.f32 %v939_v50, 0.0 }
 0x1af   : > { %v1063_v59 = vadd.f32 %v1549_v60, %v2366_v35  ;;  %v1054_v40 = vpop.f32.mrb[9].mxu1  ;;  %v957_v47 = vmax.f32 %v838_v18, %v953_v7 }
 0x1b0   : > { %v1055_v21 = vadd.f32 %v1054_v40, %v2364_v13  ;;  %v1550_v33 = vpop.f32.mrb[10].mxu1  ;;  %v955_v11 = vmax.f32 %v836_v9, %v951_v26 }
 0x1b1   : > { %v1071_v36 = vmax.f32 %v1063_v59, 0.0  ;;  %v1066_v29 = vadd.f32 %v1550_v33, %v2368_v46  ;;  %v1057_v8 = vpop.f32.mrb[11].mxu1 }
 0x1b2   : > { %v1069_v32 = vmax.f32 %v1055_v21, 0.0  ;;  %v1058_v23 = vadd.f32 %v1057_v8, %v2370_v19 }
 0x1b3   : > { %v1075_v57 = vmax.f32 %v956_v38, %v1071_v36  ;;  %v1072_v61 = vmax.f32 %v1066_v29, 0.0 }
 0x1b4   : > { %v1073_v1 = vmax.f32 %v954_v42, %v1069_v32  ;;  %v1070_v12 = vmax.f32 %v1058_v23, 0.0 }
 0x1b5   : > { %v1076_v14 = vmax.f32 %v957_v47, %v1072_v61 }
 0x1b6   : > { %v1074_v37 = vmax.f32 %v955_v11, %v1070_v12 }
 0x1b7   : > { %v1555_v54 = vpop.f32.mrb[12].mxu0 }
 0x1b8   : > { %v1182_v41 = vadd.f32 %v1555_v54, %v2366_v35  ;;  %v1173_v6 = vpop.f32.mrb[13].mxu0 }
 0x1b9   : > { %v1174_v62 = vadd.f32 %v1173_v6, %v2364_v13  ;;  %v1556_v20 = vpop.f32.mrb[14].mxu0 }
 0x1ba   : > { %v1190_v43 = vmax.f32 %v1182_v41, 0.0  ;;  %v1185_v2 = vadd.f32 %v1556_v20, %v2368_v46  ;;  %v1176_v51 = vpop.f32.mrb[15].mxu0 }
 0x1bb   : > { %v1188_v48 = vmax.f32 %v1174_v62, 0.0  ;;  %v1177_v25 = vadd.f32 %v1176_v51, %v2370_v19 }
 0x1bc   : > { %v1194_v3 = vmax.f32 %v1075_v57, %v1190_v43  ;;  %v1191_v22 = vmax.f32 %v1185_v2, 0.0 }
 0x1bd   : > { %v1192_v55 = vmax.f32 %v1073_v1, %v1188_v48  ;;  %v1189_v53 = vmax.f32 %v1177_v25, 0.0 }
 0x1be   : > { %v1195_v24 = vmax.f32 %v1076_v14, %v1191_v22 }
 0x1bf   : > { %v1561_v31 = vpop.f32.mrb[12].mxu1  ;;  %v1193_v15 = vmax.f32 %v1074_v37, %v1189_v53 }
 0x1c0   : > { %v1301_v27 = vadd.f32 %v1561_v31, %v2366_v35  ;;  %v1292_v10 = vpop.f32.mrb[13].mxu1 }
 0x1c1   : > { %v1293_v45 = vadd.f32 %v1292_v10, %v2364_v13  ;;  %v1562_v17 = vpop.f32.mrb[14].mxu1 }
 0x1c2   : > { %v1309_v63 = vmax.f32 %v1301_v27, 0.0  ;;  %v1304_v0 = vadd.f32 %v1562_v17, %v2368_v46  ;;  %v1295_v4 = vpop.f32.mrb[15].mxu1 }
 0x1c3   : > { %v1307_v30 = vmax.f32 %v1293_v45, 0.0  ;;  %v1296_v44 = vadd.f32 %v1295_v4, %v2370_v19 }
 0x1c4   : > { %v1313_v18 = vmax.f32 %v1194_v3, %v1309_v63  ;;  %v1310_v9 = vmax.f32 %v1304_v0, 0.0 }
 0x1c5   : > { %v1311_v56 = vmax.f32 %v1192_v55, %v1307_v30  ;;  %v1308_v52 = vmax.f32 %v1296_v44, 0.0 }
 0x1c6   : > { %v1314_v35 = vmax.f32 %v1195_v24, %v1310_v9 }
 0x1c7   : > { %v1312_v5 = vmax.f32 %v1193_v15, %v1308_v52 }
 0x1c8   : > { %v1488_v13 = vpack.c.bf16 %v1314_v35, %v1313_v18 }
 0x1c9   : > { %v1483_v46 = vpack.c.bf16 %v1312_v5, %v1311_v56 }
 0x1ca   : > { %1490 = vst [vmem:[%s239_s17 + $0x8] sm:$0xff] %v1488_v13  }
 0x1cb   : > { %1484 = vst [vmem:[%s239_s17] sm:$0xff] %v1483_v46  }
 0x1cc   : > { %1687 = shalt.err (!%p1684_p5)
}
 0x1cd   : > { %s1688_s12 = scalar_lea.hbm %s2411_s7, 256  ;;  %s1692_s15 = scalar_lea.hbm %s2468_s5, 512 }
 0x1ce   : > { %p1689_p6 = scmp.ne.s32.totalorder %s2411_s7, %s1688_s12  ;;  %p1693_p10 = scmp.lt.u32.totalorder %s2411_s7, %s2468_s5 }
 0x1cf   : > { %p1694_p11 = scmp.lt.u32.totalorder %s1692_s15, %s1688_s12  ;;  %p1696_p13 = scmp.lt.u32.totalorder %s1688_s12, %s2411_s7 }
 0x1d0   : > { %p1690_p7 = pnand %p1689_p6, %p1834_p4 }
 0x1d1   : > { %p1695_p12 = por %p1694_p11, %p1693_p10 }
 0x1d2   : > { %p1691_p9 = pneg %p1690_p7 }
 0x1d3   : > { %p1697_p0 = por %p1696_p13, %p1695_p12 }
 0x1d5   : > { %p1698_p1 = pnand %p1697_p0, %p1691_p9 }
 0x1d7   : > { %1701 = shalt.err (!%p1698_p1)
}
 0x1d8   : > { %s1762_s25 = smov 64   ;;  %s1763_s27 = smov 4  }
 0x1d9   : > { %1563 = dma.vmem_to_hbm [thread:$0]  (%p1834_p4), %s2413_s24, 256, %s2411_s7, %s2417_s8, %s1762_s25, %s1762_s25, %s1763_s27  }
 0x1da PF: > { %p1569_p2 = scmp.ge.s32.totalorder %s1752_s23, 2  ;;  %s1365_s29 = sand.u32 1, %s1732_s18  }
 0x1db   : > { %s1366_s21 = scalar_lea.sflag [#allocation3], %s1365_s29 }
 0x1dc   : > { %p1566_p3 = pnand %p1569_p2, %p1841_p8 }
 0x1de   : > { %1727 = dma.done.wait (!%p1566_p3), %s1366_s21, 256  }
 0x1df   : > { %1729 = vsyncadd (!%p1566_p3), %s1366_s21, 4294967040  ;;  %s18_s23 = sadd.s32 1, %s1752_s23   ;;  %s2550_s18 = smov %s1736_s19 }
 0x1e0   : > { %p15_p5 = scmp.ge.s32.totalorder %s18_s23, 4   ;;  %s2551_s19 = smov %s1740_s20 }
 0x1e1   : > { %s2552_s20 = smov %s1847_s6  ;;  %s2553_s21 = smov %s1748_s22 }
 0x1e2   : > { %s2554_s22 = smov %s2556_s26  ;;  %17 = sbr.rel (!%p15_p5) target bundleno = 4 (0x4), region = 82 }
 0x1e9   :  { %1371 = vsyncpa [#allocation3], 1 }
 0x1ea   :  { %1373 = vsyncpa [#allocation3 + $0x1], 1 }

</bundles_post_ra>
